<compile_context>
chip_gen: v7x
topology: tpu7x:2x2x1
jax: 0.10.0
libtpu: 0.0.40
codegen_flags: <defaults>
</compile_context>

<pallas_src>
import functools
import math

import jax
import jax.numpy as jnp
from jax import lax
from jax.experimental import pallas as pl
from jax.experimental.pallas import tpu as pltpu

LN_EPS = 1e-5
VMEM_LIMIT_BYTES = 48 * 1024 * 1024


# ----------------------------------------------------------------------------
# in-kernel helpers
# ----------------------------------------------------------------------------
def _layernorm_f32(x, gamma, beta):
    """LayerNorm over the last dim, f32 math (PyTorch nn.LayerNorm, eps=1e-5)."""
    mu = jnp.mean(x, axis=-1, keepdims=True)
    var = jnp.mean(jnp.square(x - mu), axis=-1, keepdims=True)
    return (x - mu) * lax.rsqrt(var + LN_EPS) * gamma + beta


# ----------------------------------------------------------------------------
# kernel 1: LayerNorm1 + fused QKV projection (no bias; nn.Linear(bias=False))
# ----------------------------------------------------------------------------
def _ln_matmul_kernel(x_ref, g_ref, b_ref, w_ref, o_ref):
    xn = _layernorm_f32(x_ref[...].astype(jnp.float32), g_ref[...], b_ref[...])
    o_ref[...] = jnp.dot(xn.astype(jnp.bfloat16), w_ref[...],
                         preferred_element_type=jnp.float32).astype(o_ref.dtype)


def _ln_matmul(x2d, gamma, beta, w, *, tm):
    Mp, C = x2d.shape
    NO = w.shape[1]
    return pl.pallas_call(
        _ln_matmul_kernel,
        out_shape=jax.ShapeDtypeStruct((Mp, NO), jnp.bfloat16),
        grid_spec=pltpu.PrefetchScalarGridSpec(
            num_scalar_prefetch=0,
            grid=(Mp // tm,),
            in_specs=[
                pl.BlockSpec((tm, C), lambda i: (i, 0)),
                pl.BlockSpec((1, C), lambda i: (0, 0)),
                pl.BlockSpec((1, C), lambda i: (0, 0)),
                pl.BlockSpec((C, NO), lambda i: (0, 0)),   # resident weight (bf16)
            ],
            out_specs=pl.BlockSpec((tm, NO), lambda i: (i, 0)),
        ),
        compiler_params=pltpu.CompilerParams(
            dimension_semantics=("parallel",),
            vmem_limit_bytes=VMEM_LIMIT_BYTES),
    )(x2d, gamma, beta, w)


# ----------------------------------------------------------------------------
# kernel 2: causal attention per (batch*head); softmax in f32 on-chip
# ----------------------------------------------------------------------------
def _attn_kernel(q_ref, k_ref, v_ref, o_ref, *, scale):
    q = q_ref[0]          # (T, Dh) bf16
    k = k_ref[0]
    v = v_ref[0]
    s = lax.dot_general(q, k, (((1,), (1,)), ((), ())),
                        preferred_element_type=jnp.float32) * scale
    T = s.shape[0]
    row = lax.broadcasted_iota(jnp.int32, (T, T), 0)
    col = lax.broadcasted_iota(jnp.int32, (T, T), 1)
    s = jnp.where(row >= col, s, jnp.float32(-1e30))       # causal mask
    m = jnp.max(s, axis=-1, keepdims=True)
    p = jnp.exp(s - m)
    p = p / jnp.sum(p, axis=-1, keepdims=True)
    # TODO(synk): attention dropout (p=0.1) omitted -- identity in eval mode.
    o = jnp.dot(p.astype(v.dtype), v, preferred_element_type=jnp.float32)
    o_ref[0] = o.astype(o_ref.dtype)


def _attention(q, k, v, *, head_size):
    BH, T, Dh = q.shape
    kernel = functools.partial(_attn_kernel, scale=1.0 / math.sqrt(head_size))
    spec = pl.BlockSpec((1, T, Dh), lambda i: (i, 0, 0))
    return pl.pallas_call(
        kernel,
        out_shape=jax.ShapeDtypeStruct((BH, T, Dh), jnp.bfloat16),
        grid_spec=pltpu.PrefetchScalarGridSpec(
            num_scalar_prefetch=0,
            grid=(BH,),
            in_specs=[spec, spec, spec],
            out_specs=spec,
        ),
        compiler_params=pltpu.CompilerParams(
            dimension_semantics=("parallel",),
            vmem_limit_bytes=VMEM_LIMIT_BYTES),
    )(q, k, v)


# ----------------------------------------------------------------------------
# kernel 3: output projection + first residual add (residual kept in f32)
# ----------------------------------------------------------------------------
def _proj_residual_kernel(a_ref, x_ref, w_ref, b_ref, o_ref):
    y = jnp.dot(a_ref[...], w_ref[...], preferred_element_type=jnp.float32)
    o_ref[...] = (x_ref[...].astype(jnp.float32) + y + b_ref[...]).astype(o_ref.dtype)


def _proj_residual(att, x2d, w, b, *, tm):
    Mp, Cc = att.shape
    C = x2d.shape[1]
    return pl.pallas_call(
        _proj_residual_kernel,
        out_shape=jax.ShapeDtypeStruct((Mp, C), jnp.float32),
        grid_spec=pltpu.PrefetchScalarGridSpec(
            num_scalar_prefetch=0,
            grid=(Mp // tm,),
            in_specs=[
                pl.BlockSpec((tm, Cc), lambda i: (i, 0)),
                pl.BlockSpec((tm, C), lambda i: (i, 0)),
                pl.BlockSpec((Cc, C), lambda i: (0, 0)),
                pl.BlockSpec((1, C), lambda i: (0, 0)),
            ],
            out_specs=pl.BlockSpec((tm, C), lambda i: (i, 0)),
        ),
        compiler_params=pltpu.CompilerParams(
            dimension_semantics=("parallel",),
            vmem_limit_bytes=VMEM_LIMIT_BYTES),
    )(att, x2d, w, b)


# ----------------------------------------------------------------------------
# kernel 4: LayerNorm2 + FFN (hidden-chunked reduction) + second residual
# ----------------------------------------------------------------------------
def _ln_ffn_kernel(x_ref, g_ref, b_ref, w1_ref, b1_ref, w2_ref, b2_ref, o_ref,
                   xn_scratch, acc_scratch):
    k = pl.program_id(1)

    @pl.when(k == 0)
    def _():
        xn = _layernorm_f32(x_ref[...].astype(jnp.float32), g_ref[...], b_ref[...])
        xn_scratch[...] = xn.astype(jnp.bfloat16)
        acc_scratch[...] = jnp.zeros_like(acc_scratch)

    h = jnp.dot(xn_scratch[...], w1_ref[...], preferred_element_type=jnp.float32)
    h = jnp.maximum(h + b1_ref[...], 0.0)                          # bias + ReLU in f32
    acc_scratch[...] += jnp.dot(h.astype(jnp.bfloat16), w2_ref[...],
                                preferred_element_type=jnp.float32)

    @pl.when(k == pl.num_programs(1) - 1)
    def _():
        # TODO(synk): FFN dropout (p=0.1) omitted -- identity in eval mode.
        o_ref[...] = (x_ref[...].astype(jnp.float32) + acc_scratch[...]
                      + b2_ref[...]).astype(o_ref.dtype)


def _ln_ffn(x2d, gamma, beta, w1, b1, w2, b2, *, tm, t_hidden):
    Mp, C = x2d.shape
    Hh = w1.shape[1]
    t_hidden = min(t_hidden, Hh)
    assert Hh % t_hidden == 0, "hidden dim must tile by t_hidden"
    return pl.pallas_call(
        _ln_ffn_kernel,
        out_shape=jax.ShapeDtypeStruct((Mp, C), jnp.float32),
        grid_spec=pltpu.PrefetchScalarGridSpec(
            num_scalar_prefetch=0,
            grid=(Mp // tm, Hh // t_hidden),
            in_specs=[
                pl.BlockSpec((tm, C), lambda i, k: (i, 0)),
                pl.BlockSpec((1, C), lambda i, k: (0, 0)),
                pl.BlockSpec((1, C), lambda i, k: (0, 0)),
                pl.BlockSpec((C, t_hidden), lambda i, k: (0, k)),
                pl.BlockSpec((1, t_hidden), lambda i, k: (0, k)),
                pl.BlockSpec((t_hidden, C), lambda i, k: (k, 0)),
                pl.BlockSpec((1, C), lambda i, k: (0, 0)),
            ],
            out_specs=pl.BlockSpec((tm, C), lambda i, k: (i, 0)),
            scratch_shapes=[
                pltpu.VMEM((tm, C), jnp.bfloat16),   # LN2(x) kept for all chunks
                pltpu.VMEM((tm, C), jnp.float32),    # f32 accumulator
            ],
        ),
        compiler_params=pltpu.CompilerParams(
            dimension_semantics=("parallel", "arbitrary"),
            vmem_limit_bytes=VMEM_LIMIT_BYTES),
    )(x2d, gamma, beta, w1, b1, w2, b2)


# ----------------------------------------------------------------------------
# RoPE tables / application (cheap elementwise glue between kernels)
# ----------------------------------------------------------------------------
def _rope_tables(T, Dh, theta=10000.0):
    freqs = jnp.exp(jnp.arange(0, Dh, 2, dtype=jnp.float32) * (-math.log(theta) / Dh))
    ang = jnp.arange(T, dtype=jnp.float32)[:, None] * freqs[None, :]   # (T, Dh/2)
    return jnp.cos(ang), jnp.sin(ang)


def _apply_rope(x, cos, sin):
    # x: (BH, T, Dh) f32; interleaved-pair rotation, same as torch.view_as_complex path
    xr = x.reshape(x.shape[0], x.shape[1], -1, 2)
    x0, x1 = xr[..., 0], xr[..., 1]
    o0 = x0 * cos[None] - x1 * sin[None]
    o1 = x0 * sin[None] + x1 * cos[None]
    return jnp.stack([o0, o1], axis=-1).reshape(x.shape)


def _pad_rows(x2d, tm):
    M = x2d.shape[0]
    Mp = pl.cdiv(M, tm) * tm
    if Mp != M:
        x2d = jnp.pad(x2d, ((0, Mp - M), (0, 0)))
    return x2d, Mp


# ----------------------------------------------------------------------------
# full Block forward
# ----------------------------------------------------------------------------
def block_forward(x, params, n_head, *, tm=128, t_hidden=512):
    """x: (B, T, C) f32 -> (B, T, C) f32.  For larger B*T raise tm to 256-512."""
    B, T, C = x.shape
    Dh = C // n_head
    assert Dh % 2 == 0, "head_size must be even for RoPE"
    Cc = n_head * Dh
    M = B * T

    x2d = x.reshape(M, C).astype(jnp.float32)
    x2d_p, Mp = _pad_rows(x2d, tm)

    # LN1 + fused QKV projection (one MXU pass over concatenated weights)
    qkv = _ln_matmul(x2d_p, params["ln1_g"], params["ln1_b"], params["w_qkv"], tm=tm)
    qkv = qkv[:M].astype(jnp.float32).reshape(B, T, 3, n_head, Dh)
    q = qkv[:, :, 0].transpose(0, 2, 1, 3).reshape(B * n_head, T, Dh)
    k = qkv[:, :, 1].transpose(0, 2, 1, 3).reshape(B * n_head, T, Dh)
    v = qkv[:, :, 2].transpose(0, 2, 1, 3).reshape(B * n_head, T, Dh)

    # TODO(synk): RoPE pair-rotation is done in plain JAX between kernels
    # (cheap elementwise); could be fused into the attention kernel.
    cos, sin = _rope_tables(T, Dh)
    q = _apply_rope(q, cos, sin)
    k = _apply_rope(k, cos, sin)

    # causal self-attention per (batch, head)
    att = _attention(q.astype(jnp.bfloat16), k.astype(jnp.bfloat16),
                     v.astype(jnp.bfloat16), head_size=Dh)          # (BH, T, Dh)
    att = att.reshape(B, n_head, T, Dh).transpose(0, 2, 1, 3).reshape(M, Cc)
    att_p, _ = _pad_rows(att, tm)

    # output projection + residual
    x1_p = _proj_residual(att_p, x2d_p, params["w_proj"], params["b_proj"], tm=tm)

    # LN2 + FFN (hidden-chunked) + residual
    out_p = _ln_ffn(x1_p, params["ln2_g"], params["ln2_b"],
                    params["w1"], params["b1"], params["w2"], params["b2"],
                    tm=tm, t_hidden=t_hidden)

    return out_p[:M].reshape(B, T, C)


# ----------------------------------------------------------------------------
# pure-JAX f32 reference (mirrors the PyTorch module, eval mode)
# ----------------------------------------------------------------------------
def _ref_block(x, p, n_head):
    B, T, C = x.shape
    Dh = C // n_head

    def ln(z, g, b):
        mu = z.mean(-1, keepdims=True)
        var = ((z - mu) ** 2).mean(-1, keepdims=True)
        return (z - mu) / jnp.sqrt(var + LN_EPS) * g + b

    h1 = ln(x, p["ln1_g"], p["ln1_b"])
    q = (h1 @ p["w_q"]).reshape(B, T, n_head, Dh).transpose(0, 2, 1, 3)
    k = (h1 @ p["w_k"]).reshape(B, T, n_head, Dh).transpose(0, 2, 1, 3)
    v = (h1 @ p["w_v"]).reshape(B, T, n_head, Dh).transpose(0, 2, 1, 3)

    cos, sin = _rope_tables(T, Dh)

    def rope4(z):
        zr = z.reshape(B, n_head, T, Dh // 2, 2)
        z0, z1 = zr[..., 0], zr[..., 1]
        return jnp.stack([z0 * cos - z1 * sin, z0 * sin + z1 * cos],
                         axis=-1).reshape(B, n_head, T, Dh)

    q, k = rope4(q), rope4(k)
    scores = jnp.einsum("bhqd,bhkd->bhqk", q, k) / math.sqrt(Dh)
    mask = jnp.tril(jnp.ones((T, T), dtype=bool))
    scores = jnp.where(mask, scores, -jnp.inf)
    prob = jax.nn.softmax(scores, axis=-1)
    o = jnp.einsum("bhqk,bhkd->bhqd", prob, v)
    o = o.transpose(0, 2, 1, 3).reshape(B, T, n_head * Dh)
    x1 = x + (o @ p["w_proj"] + p["b_proj"])
    h2 = ln(x1, p["ln2_g"], p["ln2_b"])
    ff = jnp.maximum(h2 @ p["w1"] + p["b1"], 0.0) @ p["w2"] + p["b2"]
    return x1 + ff


# ----------------------------------------------------------------------------
if __name__ == "__main__":
    # Small shapes consistent with the module structure (n_embd divisible by
    # n_head, T <= block_size); real config would be n_embd=1024, n_head=24.
    B, T = 2, 128
    n_embd, n_head = 256, 4
    head_size = n_embd // n_head
    hidden = 4 * n_embd

    key = jax.random.PRNGKey(0)
    (kx, kq, kk, kv, kp, kbp, k1, kb1, k2, kb2, kg, kb) = jax.random.split(key, 12)

    x = jax.random.normal(kx, (B, T, n_embd), dtype=jnp.float32)

    def lin_w(kr, fan_in, shape):
        return jax.random.uniform(kr, shape, jnp.float32, -1.0, 1.0) / math.sqrt(fan_in)

    w_q = lin_w(kq, n_embd, (n_embd, n_head * head_size))
    w_k = lin_w(kk, n_embd, (n_embd, n_head * head_size))
    w_v = lin_w(kv, n_embd, (n_embd, n_head * head_size))
    w_proj = lin_w(kp, n_head * head_size, (n_head * head_size, n_embd))
    b_proj = lin_w(kbp, n_head * head_size, (n_embd,))
    w1 = lin_w(k1, n_embd, (n_embd, hidden))
    b1 = lin_w(kb1, n_embd, (hidden,))
    w2 = lin_w(k2, hidden, (hidden, n_embd))
    b2 = lin_w(kb2, hidden, (n_embd,))
    g1, g2 = 1.0 + 0.1 * jax.random.normal(kg, (2, n_embd), dtype=jnp.float32)
    be1, be2 = 0.1 * jax.random.normal(kb, (2, n_embd), dtype=jnp.float32)

    # Kernel-side params: weights cast to bf16 once; LN/bias params in f32.
    params = dict(
        ln1_g=g1.reshape(1, -1), ln1_b=be1.reshape(1, -1),
        ln2_g=g2.reshape(1, -1), ln2_b=be2.reshape(1, -1),
        w_qkv=jnp.concatenate([w_q, w_k, w_v], axis=1).astype(jnp.bfloat16),
        w_proj=w_proj.astype(jnp.bfloat16),
        b_proj=b_proj.reshape(1, -1),
        w1=w1.astype(jnp.bfloat16), b1=b1.reshape(1, -1),
        w2=w2.astype(jnp.bfloat16), b2=b2.reshape(1, -1),
    )

    out = block_forward(x, params, n_head, tm=128, t_hidden=512)
    out = jax.block_until_ready(out)

    ref = _ref_block(
        x,
        dict(ln1_g=g1, ln1_b=be1, ln2_g=g2, ln2_b=be2,
             w_q=w_q, w_k=w_k, w_v=w_v, w_proj=w_proj, b_proj=b_proj,
             w1=w1, b1=b1, w2=w2, b2=b2),
        n_head)

    assert out.shape == (B, T, n_embd)
    # bf16 MXU operands with f32 accumulation vs. a pure-f32 reference.
    assert bool(jnp.allclose(out, ref, atol=5e-2, rtol=5e-2)), \
        float(jnp.max(jnp.abs(out - ref)))

    print("KERNEL_OK")
</pallas_src>

<mosaic_0001>
module attributes {stable_mosaic.version = 11 : i64} {
  func.func @_ln_matmul_kernel(%arg0: i32, %arg1: memref<128x256xf32, #tpu.memory_space<vmem>>, %arg2: memref<1x256xf32, #tpu.memory_space<vmem>>, %arg3: memref<1x256xf32, #tpu.memory_space<vmem>>, %arg4: memref<256x768xbf16, #tpu.memory_space<vmem>>, %arg5: memref<128x768xbf16, #tpu.memory_space<vmem>>) attributes {dimension_semantics = [#tpu.dimension_semantics<parallel>], iteration_bounds = array<i64: 2>, scalar_prefetch = 0 : i64, scratch_operands = 0 : i64, tpu.core_type = #tpu.core_type<tc>, window_params = [{transform_indices = @transform_0, window_bounds = array<i64: 128, 256>}, {pipeline_mode = #tpu.pipeline_mode<synchronous>, transform_indices = @transform_1, window_bounds = array<i64: 1, 256>}, {pipeline_mode = #tpu.pipeline_mode<synchronous>, transform_indices = @transform_2, window_bounds = array<i64: 1, 256>}, {pipeline_mode = #tpu.pipeline_mode<synchronous>, transform_indices = @transform_3, window_bounds = array<i64: 256, 768>}, {transform_indices = @transform_4, window_bounds = array<i64: 128, 768>}]} {
    %c0 = arith.constant 0 : index
    %c0_0 = arith.constant 0 : index
    %0 = vector.load %arg1[%c0, %c0_0] : memref<128x256xf32, #tpu.memory_space<vmem>>, vector<128x256xf32>
    %c0_1 = arith.constant 0 : index
    %c0_2 = arith.constant 0 : index
    %1 = vector.load %arg2[%c0_1, %c0_2] : memref<1x256xf32, #tpu.memory_space<vmem>>, vector<1x256xf32>
    %c0_3 = arith.constant 0 : index
    %c0_4 = arith.constant 0 : index
    %2 = vector.load %arg3[%c0_3, %c0_4] : memref<1x256xf32, #tpu.memory_space<vmem>>, vector<1x256xf32>
    %cst = arith.constant dense<0.000000e+00> : vector<128xf32>
    %3 = vector.multi_reduction <add>, %0, %cst [1] : vector<128x256xf32> to vector<128xf32>
    %4 = vector.shape_cast %3 : vector<128xf32> to vector<128x1xf32>
    %cst_5 = arith.constant 2.560000e+02 : f32
    %5 = vector.broadcast %cst_5 : f32 to vector<128x1xf32>
    %6 = arith.divf %4, %5 : vector<128x1xf32>
    %7 = vector.broadcast %6 : vector<128x1xf32> to vector<128x256xf32>
    %8 = arith.subf %0, %7 : vector<128x256xf32>
    %9 = arith.mulf %8, %8 : vector<128x256xf32>
    %cst_6 = arith.constant dense<0.000000e+00> : vector<128xf32>
    %10 = vector.multi_reduction <add>, %9, %cst_6 [1] : vector<128x256xf32> to vector<128xf32>
    %11 = vector.shape_cast %10 : vector<128xf32> to vector<128x1xf32>
    %cst_7 = arith.constant 2.560000e+02 : f32
    %12 = vector.broadcast %cst_7 : f32 to vector<128x1xf32>
    %13 = arith.divf %11, %12 : vector<128x1xf32>
    %14 = vector.broadcast %6 : vector<128x1xf32> to vector<128x256xf32>
    %15 = arith.subf %0, %14 : vector<128x256xf32>
    %cst_8 = arith.constant 9.99999974E-6 : f32
    %16 = vector.broadcast %cst_8 : f32 to vector<128x1xf32>
    %17 = arith.addf %13, %16 : vector<128x1xf32>
    %18 = math.rsqrt %17 : vector<128x1xf32>
    %19 = vector.broadcast %18 : vector<128x1xf32> to vector<128x256xf32>
    %20 = arith.mulf %15, %19 : vector<128x256xf32>
    %21 = vector.broadcast %1 : vector<1x256xf32> to vector<128x256xf32>
    %22 = arith.mulf %20, %21 : vector<128x256xf32>
    %23 = vector.broadcast %2 : vector<1x256xf32> to vector<128x256xf32>
    %24 = arith.addf %22, %23 : vector<128x256xf32>
    %25 = arith.truncf %24 : vector<128x256xf32> to vector<128x256xbf16>
    %c0_9 = arith.constant 0 : index
    %c0_10 = arith.constant 0 : index
    %26 = vector.load %arg4[%c0_9, %c0_10] : memref<256x768xbf16, #tpu.memory_space<vmem>>, vector<256x768xbf16>
    %cst_11 = arith.constant dense<0.000000e+00> : vector<128x768xf32>
    %27 = tpu.matmul %25, %26, %cst_11 {dimension_numbers = #tpu.dot_dimension_numbers<[1], [0], [0], [1], [0, 0, 1, 1], [], []>} : vector<128x256xbf16>, vector<256x768xbf16>, vector<128x768xf32> -> vector<128x768xf32>
    %28 = arith.truncf %27 : vector<128x768xf32> to vector<128x768xbf16>
    %c0_12 = arith.constant 0 : index
    %c0_13 = arith.constant 0 : index
    %29 = vector.load %arg5[%c0_12, %c0_13] : memref<128x768xbf16, #tpu.memory_space<vmem>>, vector<128x768xbf16>
    tpu.vector_store %arg5[%c0_12, %c0_13], %28 {strides = array<i32>} : memref<128x768xbf16, #tpu.memory_space<vmem>>, vector<128x768xbf16>,
    return
  }
  func.func @transform_0(%arg0: i32) -> (i32, i32) {
    %c0_i32 = arith.constant 0 : i32
    %c0_i32_0 = arith.constant 0 : i32
    return %arg0, %c0_i32 : i32, i32
  }
  func.func @transform_1(%arg0: i32) -> (i32, i32) {
    %c0_i32 = arith.constant 0 : i32
    %c0_i32_0 = arith.constant 0 : i32
    %c0_i32_1 = arith.constant 0 : i32
    return %c0_i32, %c0_i32_0 : i32, i32
  }
  func.func @transform_2(%arg0: i32) -> (i32, i32) {
    %c0_i32 = arith.constant 0 : i32
    %c0_i32_0 = arith.constant 0 : i32
    %c0_i32_1 = arith.constant 0 : i32
    return %c0_i32, %c0_i32_0 : i32, i32
  }
  func.func @transform_3(%arg0: i32) -> (i32, i32) {
    %c0_i32 = arith.constant 0 : i32
    %c0_i32_0 = arith.constant 0 : i32
    %c0_i32_1 = arith.constant 0 : i32
    return %c0_i32, %c0_i32_0 : i32, i32
  }
  func.func @transform_4(%arg0: i32) -> (i32, i32) {
    %c0_i32 = arith.constant 0 : i32
    %c0_i32_0 = arith.constant 0 : i32
    return %arg0, %c0_i32 : i32, i32
  }
}

</mosaic_0001>

<bundles_post_ra>
// kernel: tpu_custom_call.1
= control target key start
LH: loop header
LB: loop body
LE: loop exit
PB: predicated region body
PF: predicated region fallthrough
CT: control target
= control target key end

     0   :  { %9 = vsyncpa [#allocation3], 0  ;;  %s3341_s0 = inlined_call_operand.hbm [shape: f32[256,256], index: 0, kind: input, shape index: {}]   ;;  %s3342_s1 = inlined_call_operand.vmem [shape: f32[1,256], index: 1, kind: input, shape index: {}]   ;;  %s3343_s2 = inlined_call_operand.vmem [shape: f32[1,256], index: 2, kind: input, shape index: {}]   ;;  %s3344_s3 = inlined_call_operand.hbm [shape: bf16[256,768], index: 3, kind: input, shape index: {}]   ;;  %s3345_s4 = inlined_call_operand.hbm [shape: bf16[256,768], index: 4, kind: output, shape index: {}]  }
   0x1   :  { %11 = vsyncpa [#allocation3 + $0x1], 0 }
   0x2   :  { %12 = vsyncpa [#allocation6], 0 }
   0x3   :  { %13 = vsyncpa [#allocation4], 0 }
   0x4   :  { %15 = vsyncpa [#allocation4 + $0x1], 0  ;;  %s2623_s15 = smov 0   ;;  %s2625_s16 = smov 0  }
   0x5   :  { %s2627_s17 = smov 0   ;;  %s2629_s18 = smov 0  }
   0x6 LB: > { %s2644_s19 = sadd.s32 4294967295, %s2587_s18   ;;  %s1976_s20 = sadd.s32 4294967294, %s2587_s18   ;;  %s2587_s18 = sphi %s2629_s18, %s3365_s18   ;;  %s2583_s17 = sphi %s2627_s17, %s3364_s17   ;;  %s2579_s16 = sphi %s2625_s16, %s3363_s16   ;;  %s2575_s15 = sphi %s2623_s15, %s3362_s15  }
   0x7   : > { %p41_p0 = scmp.ne.s32.totalorder %s2579_s16, %s2575_s15  ;;  %p3346_p1 = scmp.eq.s32.totalorder %s2644_s19, 0 }
   0x8   : > { %p134_p3 = scmp.eq.s32.totalorder %s1976_s20, 1  ;;  %p1977_p5 = scmp.ge.s32.totalorder %s2587_s18, 1 }
   0x9   : > { %p2653_p4 = por %p3346_p1, %p41_p0  ;;  %p141_p7 = scmp.lt.s32.totalorder %s2587_s18, 3 }
   0xa   : > { %p2658_p6 = por %p134_p3, %p41_p0  ;;  %s2589_s24 = smov [#allocation5]  }
   0xb   : > { %s3349_s21 = scalar_select %p2653_p4, 1, 0 }
   0xc   : > { %s3350_s22 = scalar_select %p2658_p6, 1, 0 }
   0xd   : > { %p2663_p8 = pnand %p1977_p5, %p141_p7  ;;  %s159_s25 = sshll.u32 %s2589_s24, 4  ;;  %s2667_s25 = int_to_ptr.vmem [resolvable:$true] %s159_s25 }
   0xe   : > { %s2679_s27 = sadd.s32 1, %s2587_s18   ;;  %s28_s28 = sadd.s32 1, %s2583_s17 }
   0xf   : > { %s3351_s23 = scalar_select %p2663_p8, 1, 0 }
  0x10   : > { %p2228_p9 = pneg %p2663_p8  ;;  %s25_s29 = ssub.s32 %s2587_s18, %s2679_s27 }
  0x11   : > { %s2459_s6 = scalar_lea.hbm %s3344_s3, 12288 }
  0x12   : > { %p2674_p11 = pnand %p2228_p9, %p3346_p1  ;;  %p2460_p12 = scmp.ne.s32.totalorder %s3344_s3, %s2459_s6 }
  0x13   : > { %p2466_p5 = scmp.lt.u32.totalorder %s2459_s6, %s3344_s3 }
  0x14   : > { %p2461_p13 = pneg %p2674_p11 }
  0x16   : > { %p2462_p0 = pnand %p2461_p13, %p2460_p12 }
  0x18   : > { %p2463_p3 = pneg %p2462_p0 }
  0x1a   : > { %p2468_p7 = pnand %p2466_p5, %p2463_p3 }
  0x1c   : > { %2471 = shalt.err (!%p2468_p7)
}
  0x1d   : > { %s2472_s11 = scalar_lea.vmem %s2667_s25, 12288  ;;  %p2480_p2 = scmp.lt.s32.totalorder %s2667_s25, %s2667_s25 }
  0x1e   : > { %p2473_p9 = scmp.ne.s32.totalorder %s2667_s25, %s2472_s11  ;;  %p2481_p6 = scmp.lt.s32.totalorder %s2472_s11, %s2472_s11 }
  0x20   : > { %p2475_p10 = pnand %p2473_p9, %p2461_p13  ;;  %p2482_p4 = por %p2481_p6, %p2480_p2 }
  0x22   : > { %p2476_p1 = pneg %p2475_p10 }
  0x24   : > { %p2483_p8 = pnand %p2482_p4, %p2476_p1 }
  0x26   : > { %2486 = shalt.err (!%p2483_p8)
}
  0x27   : > { %s2590_s12 = smov 384   ;;  %s2591_s13 = smov 24  }
  0x28   : > { %2231 = dma.hbm_to_vmem [thread:$0]  (!%p2674_p11), %s3344_s3, 12288, %s2667_s25, [#allocation6], %s2590_s12, %s2590_s12, %s2591_s13  }
  0x29   : > { %p26_p2 = scmp.eq.s32.totalorder %s25_s29, 0  ;;  %p35_p1 = scmp.ne.s32.totalorder %s2583_s17, %s2579_s16 }
  0x2a   : > { %p36_p4 = scmp.eq.s32.totalorder %s2587_s18, 0  ;;  %p2241_p6 = scmp.lt.s32.totalorder %s2587_s18, 2 }
  0x2b   : > { %s2710_s24 = scalar_select %p26_p2, %s2583_s17, %s28_s28  }
  0x2c   : > { %p37_p8 = por %p36_p4, %p35_p1  ;;  %p3353_p10 = scmp.eq.s32.totalorder %s2644_s19, 1 }
  0x2d   : > { %s173_s5 = sand.u32 1, %s2583_s17   ;;  %s2137_s6 = sshll.u32 %s2587_s18, 12 }
  0x2e   : > { %p2714_p12 = por %p3353_p10, %p35_p1  ;;  %s1980_s7 = sshll.u32 %s173_s5, 8 }
  0x2f   : > { %s2723_s9 = scalar_lea.hbm %s3341_s0, %s2137_s6  ;;  %s177_s25 = scalar_lea.vmem [#allocation2], %s1980_s7 }
  0x30   : > { %s185_s28 = sshll.u32 %s177_s25, 4  ;;  %p2725_p11 = pnand %p2241_p6, %p37_p8  ;;  %s2729_s28 = int_to_ptr.vmem [resolvable:$true] %s185_s28 }
  0x31   : > { %s2731_s10 = scalar_lea.sflag [#allocation3], %s173_s5  ;;  %s2487_s11 = scalar_lea.hbm %s2723_s9, 4096 }
  0x32   : > { %p2488_p13 = scmp.ne.s32.totalorder %s2723_s9, %s2487_s11  ;;  %p2489_p0 = pneg %p2725_p11 }
  0x33   : > { %s2492_s14 = scalar_lea.hbm %s3341_s0, 8192  ;;  %p2493_p7 = scmp.lt.u32.totalorder %s2723_s9, %s3341_s0 }
  0x34   : > { %p2490_p3 = pnand %p2489_p0, %p2488_p13  ;;  %p2494_p9 = scmp.lt.u32.totalorder %s2492_s14, %s2487_s11 }
  0x35   : > { %p2496_p1 = scmp.lt.u32.totalorder %s2487_s11, %s2723_s9 }
  0x36   : > { %p2491_p5 = pneg %p2490_p3  ;;  %p2495_p2 = por %p2494_p9, %p2493_p7 }
  0x38   : > { %p2497_p4 = por %p2496_p1, %p2495_p2 }
  0x3a   : > { %p2498_p6 = pnand %p2497_p4, %p2491_p5 }
  0x3c   : > { %2501 = shalt.err (!%p2498_p6)
}
  0x3d   : > { %s2502_s5 = scalar_lea.vmem %s2729_s28, 4096  ;;  %s2592_s7 = smov [#allocation2]  }
  0x3e   : > { %p2503_p8 = scmp.ne.s32.totalorder %s2729_s28, %s2502_s5  ;;  %s2507_s26 = sshll.u32 %s2592_s7, 4  ;;  %s2508_s26 = int_to_ptr.vmem [resolvable:$false] %s2507_s26 }
  0x3f   : > { %s2509_s8 = scalar_lea.vmem %s2508_s26, 8192  ;;  %p2510_p3 = scmp.lt.s32.totalorder %s2729_s28, %s2508_s26 }
  0x40   : > { %p2505_p10 = pnand %p2503_p8, %p2489_p0  ;;  %p2511_p7 = scmp.lt.s32.totalorder %s2509_s8, %s2502_s5 }
  0x42   : > { %p2506_p13 = pneg %p2505_p10  ;;  %p2512_p9 = por %p2511_p7, %p2510_p3 }
  0x44   : > { %p2513_p2 = pnand %p2512_p9, %p2506_p13 }
  0x46   : > { %2516 = shalt.err (!%p2513_p2)
}
  0x47   : > { %s2593_s25 = smov 256   ;;  %s2594_s11 = smov 16  }
  0x48   : > { %2235 = dma.hbm_to_vmem [thread:$0]  (!%p2725_p11), %s2723_s9, 4096, %s2729_s28, %s2731_s10, %s2593_s25, %s2593_s25, %s2594_s11  }
  0x49   : > { %p3356_p0 = scmp.ne.s32.totalorder %s3351_s23, 0 }
  0x4a   : > { %s2762_s12 = sand.u32 (!%p3356_p0), 1, %s2579_s16   ;;  %p3357_p5 = scmp.ne.s32.totalorder (!%p3356_p0), %s3349_s21, 0 }
  0x4b   : > { %197 = sbr.rel (%p3356_p0) target bundleno = 729 (0x2d9), region = 36  ;;  %s1985_s13 = sshll.u32 (!%p3356_p0), %s2762_s12, 8 }
  0x4c   : > { %s200_s14 = scalar_lea.sflag (!%p3356_p0), [#allocation3], %s2762_s12  ;;  %s2766_s20 = scalar_lea.vmem (!%p3356_p0), [#allocation2], %s1985_s13 }
  0x52   : > { %2562 = dma.done.wait (%p3357_p5), %s200_s14, 4096  }
  0x53   : > { %2564 = vsyncadd (%p3357_p5), %s200_s14, 4294963200  ;;  %p3358_p11 = scmp.eq.s32.totalorder %s2644_s19, 0 }
  0x55   : > { %2566 = dma.done.wait (%p3358_p11), [#allocation6], 12288   ;;  %p3359_p1 = pmov %p3358_p11 }
  0x56   : > { %v2777_v0 = vld [vmem:[%s2766_s20] sm:$0xff]  ;;  %v2780_v1 = vld [vmem:[%s2766_s20 + $0x8] sm:$0xff]  ;;  %v2791_v5 = vld [vmem:[%s2766_s20 + $0x10] sm:$0xff]  ;;  %s2218_s29 = smul.u32 384, %s2762_s12  ;;  %s2595_s11 = smov [#allocation7]  }
  0x57   : > { %2568 = vsyncadd (%p3359_p1), [#allocation6], 4294955008  ;;  %v2783_v2 = vld [vmem:[%s2766_s20 + $0x20] sm:$0xff]  ;;  %v268_v3 = vadd.f32 %v2780_v1, %v2777_v0  ;;  %v2788_v4 = vld [vmem:[%s2766_s20 + $0x28] sm:$0xff]  ;;  %s2219_s6 = smul.u32 6144, %s2644_s19  ;;  %s1879_s19 = scalar_lea.sflag [#allocation4], %s2762_s12 }
  0x58   : > { %v2794_v6 = vld [vmem:[%s2766_s20 + $0x18] sm:$0xff]  ;;  %v274_v7 = vadd.f32 %v2788_v4, %v2783_v2  ;;  %v2799_v8 = vld [vmem:[%s2766_s20 + $0x30] sm:$0xff]  ;;  %v2809_v12 = vld [vmem:[%s2766_s20 + $0x40] sm:$0xff]  ;;  %s3240_s10 = scalar_lea.vmem [#allocation7], %s2218_s29  ;;  %s2521_s13 = sshll.u32 %s2595_s11, 4  ;;  %s2522_s13 = int_to_ptr.vmem [resolvable:$false] %s2521_s13 }
  0x59   : > { %v2802_v9 = vld [vmem:[%s2766_s20 + $0x38] sm:$0xff]  ;;  %269 = vadd.xlane.f32.xlu0 %v268_v3  ;;  %v271_v10 = vadd.f32 %v2794_v6, %v2791_v5  ;;  %v2812_v13 = vld [vmem:[%s2766_s20 + $0x48] sm:$0xff]  ;;  %v2815_v14 = vld [vmem:[%s2766_s20 + $0x50] sm:$0xff]  ;;  %s1893_s5 = sshll.u32 %s3240_s10, 4  ;;  %s3291_s8 = scalar_lea.hbm %s3345_s4, %s2219_s6  ;;  %s3295_s5 = int_to_ptr.vmem [resolvable:$true] %s1893_s5 }
  0x5a   : > { %275 = vadd.xlane.f32.xlu1 %v274_v7  ;;  %v277_v11 = vadd.f32 %v2802_v9, %v2799_v8  ;;  %v2818_v15 = vld [vmem:[%s2766_s20 + $0x58] sm:$0xff]  ;;  %v280_v16 = vadd.f32 %v2812_v13, %v2809_v12  ;;  %v2825_v18 = vld [vmem:[%s2766_s20 + $0x60] sm:$0xff]  ;;  %v2828_v19 = vld [vmem:[%s2766_s20 + $0x68] sm:$0xff]  ;;  %s2517_s25 = scalar_lea.vmem %s3295_s5, 6144  ;;  %s2523_s14 = scalar_lea.vmem %s2522_s13, 12288 }
  0x5b   : > { %v283_v17 = vadd.f32 %v2818_v15, %v2815_v14  ;;  %v2831_v20 = vld [vmem:[%s2766_s20 + $0x70] sm:$0xff]  ;;  %v2834_v21 = vld [vmem:[%s2766_s20 + $0x78] sm:$0xff]  ;;  %v2837_v22 = vld [vmem:[%s2766_s20 + $0x80] sm:$0xff]  ;;  %v286_v24 = vadd.f32 %v2828_v19, %v2825_v18  ;;  %p2518_p4 = scmp.ne.s32.totalorder %s3295_s5, %s2517_s25  ;;  %p2524_p10 = scmp.lt.s32.totalorder %s3295_s5, %s2522_s13 }
  0x5c   : > { %v2840_v23 = vld [vmem:[%s2766_s20 + $0x88] sm:$0xff]  ;;  %v2845_v25 = vld [vmem:[%s2766_s20 + $0x90] sm:$0xff]  ;;  %v2848_v26 = vld [vmem:[%s2766_s20 + $0x98] sm:$0xff]  ;;  %v289_v27 = vadd.f32 %v2834_v21, %v2831_v20  ;;  %p2525_p13 = scmp.lt.s32.totalorder %s2523_s14, %s2517_s25 }
  0x5d   : > { %272 = vadd.xlane.f32.xlu0 %v271_v10  ;;  %v2853_v28 = vld [vmem:[%s2766_s20 + $0xa0] sm:$0xff]  ;;  %v2856_v29 = vld [vmem:[%s2766_s20 + $0xa8] sm:$0xff]  ;;  %v292_v30 = vadd.f32 %v2840_v23, %v2837_v22  ;;  %v2861_v31 = vld [vmem:[%s2766_s20 + $0xb0] sm:$0xff]  ;;  %v295_v33 = vadd.f32 %v2848_v26, %v2845_v25  ;;  %p2519_p6 = pnand %p2518_p4, %p2714_p12 }
  0x5e   : > { %278 = vadd.xlane.f32.xlu1 %v277_v11  ;;  %v2864_v32 = vld [vmem:[%s2766_s20 + $0xb8] sm:$0xff]  ;;  %v2869_v34 = vld [vmem:[%s2766_s20 + $0xc0] sm:$0xff]  ;;  %v2872_v35 = vld [vmem:[%s2766_s20 + $0xc8] sm:$0xff]  ;;  %v298_v36 = vadd.f32 %v2856_v29, %v2853_v28  ;;  %p2526_p3 = por %p2525_p13, %p2524_p10 }
  0x5f   : > { %v2877_v37 = vld [vmem:[%s2766_s20 + $0xd0] sm:$0xff]  ;;  %v2880_v38 = vld [vmem:[%s2766_s20 + $0xd8] sm:$0xff]  ;;  %v301_v39 = vadd.f32 %v2864_v32, %v2861_v31  ;;  %v2885_v40 = vld [vmem:[%s2766_s20 + $0xe0] sm:$0xff]  ;;  %v304_v42 = vadd.f32 %v2872_v35, %v2869_v34  ;;  %p2520_p8 = pneg %p2519_p6 }
  0x60   : > { %v2888_v41 = vld [vmem:[%s2766_s20 + $0xe8] sm:$0xff]  ;;  %v2893_v43 = vld [vmem:[%s2766_s20 + $0xf0] sm:$0xff]  ;;  %v2896_v44 = vld [vmem:[%s2766_s20 + $0xf8] sm:$0xff]  ;;  %v307_v45 = vadd.f32 %v2880_v38, %v2877_v37 }
  0x61   : > { %281 = vadd.xlane.f32.xlu0 %v280_v16  ;;  %v310_v46 = vadd.f32 %v2888_v41, %v2885_v40  ;;  %v313_v47 = vadd.f32 %v2896_v44, %v2893_v43  ;;  %v2283_v48 = vld [vmem:[#allocation5 + $0x4] ss:$24 sps:$4 sm:$0xff]   ;;  %v2287_v50 = vld [vmem:[#allocation5] ss:$24 sps:$4 sm:$0xff]   ;;  %v2289_v52 = vld [vmem:[#allocation5 + $0x34] ss:$24 sps:$4 sm:$0xff]   ;;  %p2527_p7 = pnand %p2526_p3, %p2520_p8 }
  0x62   : > { %284 = vadd.xlane.f32.xlu1 %v283_v17  ;;  %v2285_v49 = vld [vmem:[#allocation5 + $0xc] ss:$24 sps:$4 sm:$0xff]   ;;  %v2288_v51 = vld [vmem:[#allocation5 + $0x8] ss:$24 sps:$4 sm:$0xff]   ;;  %v2291_v53 = vld [vmem:[#allocation5 + $0x3c] ss:$24 sps:$4 sm:$0xff]   ;;  %1203 = vmatprep.subr.bf16.mxu0 %v2283_v48 }
  0x63   : > { %1316 = vmatprep.subr.bf16.mxu1 %v2285_v49  ;;  %1204 = vmatpush1.bf16.msra.mxu0 %v2287_v50  ;;  %v2293_v54 = vld [vmem:[#allocation5 + $0x30] ss:$24 sps:$4 sm:$0xff]   ;;  %v2295_v56 = vld [vmem:[#allocation5 + $0x64] ss:$24 sps:$4 sm:$0xff]   ;;  %v2299_v58 = vld [vmem:[#allocation5 + $0x60] ss:$24 sps:$4 sm:$0xff]  }
  0x64   : > { %1317 = vmatpush1.bf16.msra.mxu1 %v2288_v51  ;;  %v2294_v55 = vld [vmem:[#allocation5 + $0x38] ss:$24 sps:$4 sm:$0xff]   ;;  %1205 = vmatprep.subr.bf16.mxu0 %v2289_v52  ;;  %v2297_v57 = vld [vmem:[#allocation5 + $0x6c] ss:$24 sps:$4 sm:$0xff]   ;;  %v2300_v59 = vld [vmem:[#allocation5 + $0x68] ss:$24 sps:$4 sm:$0xff]  }
  0x65   : > { %287 = vadd.xlane.f32.xlu0 %v286_v24  ;;  %1318 = vmatprep.subr.bf16.mxu1 %v2291_v53  ;;  %v2301_v60 = vld [vmem:[#allocation5 + $0x94] ss:$24 sps:$4 sm:$0xff]   ;;  %v2305_v62 = vld [vmem:[#allocation5 + $0x90] ss:$24 sps:$4 sm:$0xff]   ;;  %v2307_v3 = vld [vmem:[#allocation5 + $0xc4] ss:$24 sps:$4 sm:$0xff]  }
  0x66   : > { %290 = vadd.xlane.f32.xlu1 %v289_v27  ;;  %v2303_v61 = vld [vmem:[#allocation5 + $0x9c] ss:$24 sps:$4 sm:$0xff]   ;;  %v2306_v63 = vld [vmem:[#allocation5 + $0x98] ss:$24 sps:$4 sm:$0xff]   ;;  %v2309_v7 = vld [vmem:[#allocation5 + $0xcc] ss:$24 sps:$4 sm:$0xff]  }
  0x67   : > { %1206 = vmatpush1.bf16.msra.mxu0 %v2293_v54  ;;  %v2311_v10 = vld [vmem:[#allocation5 + $0xc0] ss:$24 sps:$4 sm:$0xff]   ;;  %v2313_v16 = vld [vmem:[#allocation5 + $0xf4] ss:$24 sps:$4 sm:$0xff]   ;;  %v2317_v24 = vld [vmem:[#allocation5 + $0xf0] ss:$24 sps:$4 sm:$0xff]  }
  0x68   : > { %1319 = vmatpush1.bf16.msra.mxu1 %v2294_v55  ;;  %1207 = vmatprep.subr.bf16.mxu0 %v2295_v56  ;;  %v2312_v11 = vld [vmem:[#allocation5 + $0xc8] ss:$24 sps:$4 sm:$0xff]   ;;  %v2315_v17 = vld [vmem:[#allocation5 + $0xfc] ss:$24 sps:$4 sm:$0xff]   ;;  %v2318_v27 = vld [vmem:[#allocation5 + $0xf8] ss:$24 sps:$4 sm:$0xff]  }
  0x69   : > { %293 = vadd.xlane.f32.xlu0 %v292_v30  ;;  %1320 = vmatprep.subr.bf16.mxu1 %v2297_v57  ;;  %v2319_v30 = vld [vmem:[#allocation5 + $0x124] ss:$24 sps:$4 sm:$0xff]   ;;  %v2335_v50 = vld [vmem:[#allocation5 + $0x180] ss:$24 sps:$4 sm:$0xff]   ;;  %v2337_v52 = vld [vmem:[#allocation5 + $0x1b4] ss:$24 sps:$4 sm:$0xff]  }
  0x6a   : > { %296 = vadd.xlane.f32.xlu1 %v295_v33  ;;  %v2321_v33 = vld [vmem:[#allocation5 + $0x12c] ss:$24 sps:$4 sm:$0xff]   ;;  %v2336_v51 = vld [vmem:[#allocation5 + $0x188] ss:$24 sps:$4 sm:$0xff]   ;;  %v2339_v53 = vld [vmem:[#allocation5 + $0x1bc] ss:$24 sps:$4 sm:$0xff]  }
  0x6b   : > { %1208 = vmatpush1.bf16.msra.mxu0 %v2299_v58  ;;  %v2331_v48 = vld [vmem:[#allocation5 + $0x184] ss:$24 sps:$4 sm:$0xff]  }
  0x6c   : > { %1321 = vmatpush1.bf16.msra.mxu1 %v2300_v59  ;;  %1209 = vmatprep.subr.bf16.mxu0 %v2301_v60  ;;  %v2333_v49 = vld [vmem:[#allocation5 + $0x18c] ss:$24 sps:$4 sm:$0xff]  }
  0x6d   : > { %299 = vadd.xlane.f32.xlu0 %v298_v36  ;;  %1322 = vmatprep.subr.bf16.mxu1 %v2303_v61  ;;  %v2323_v36 = vld [vmem:[#allocation5 + $0x120] ss:$24 sps:$4 sm:$0xff]  }
  0x6e   : > { %302 = vadd.xlane.f32.xlu1 %v301_v39  ;;  %v2324_v39 = vld [vmem:[#allocation5 + $0x128] ss:$24 sps:$4 sm:$0xff]  }
  0x6f   : > { %1210 = vmatpush1.bf16.msra.mxu0 %v2305_v62 }
  0x70   : > { %1323 = vmatpush1.bf16.msra.mxu1 %v2306_v63  ;;  %1211 = vmatprep.subr.bf16.mxu0 %v2307_v3 }
  0x71   : > { %305 = vadd.xlane.f32.xlu0 %v304_v42  ;;  %1324 = vmatprep.subr.bf16.mxu1 %v2309_v7  ;;  %v2325_v42 = vld [vmem:[#allocation5 + $0x154] ss:$24 sps:$4 sm:$0xff]  }
  0x72   : > { %308 = vadd.xlane.f32.xlu1 %v307_v45  ;;  %v2327_v45 = vld [vmem:[#allocation5 + $0x15c] ss:$24 sps:$4 sm:$0xff]  }
  0x73   : > { %1212 = vmatpush1.bf16.msra.mxu0 %v2311_v10 }
  0x74   : > { %1325 = vmatpush1.bf16.msra.mxu1 %v2312_v11  ;;  %1213 = vmatprep.subr.bf16.mxu0 %v2313_v16 }
  0x75   : > { %311 = vadd.xlane.f32.xlu0 %v310_v46  ;;  %1326 = vmatprep.subr.bf16.mxu1 %v2315_v17  ;;  %v2329_v46 = vld [vmem:[#allocation5 + $0x150] ss:$24 sps:$4 sm:$0xff]  }
  0x76   : > { %314 = vadd.xlane.f32.xlu1 %v313_v47  ;;  %v2330_v47 = vld [vmem:[#allocation5 + $0x158] ss:$24 sps:$4 sm:$0xff]  }
  0x77   : > { %1214 = vmatpush1.bf16.msra.mxu0 %v2317_v24 }
  0x78   : > { %1327 = vmatpush1.bf16.msra.mxu1 %v2318_v27  ;;  %1215 = vmatprep.subr.bf16.mxu0 %v2319_v30 }
  0x79   : > { %1328 = vmatprep.subr.bf16.mxu1 %v2321_v33 }
  0x7b   : > { %1216 = vmatpush1.bf16.msra.mxu0 %v2323_v36 }
  0x7c   : > { %1329 = vmatpush1.bf16.msra.mxu1 %v2324_v39  ;;  %1217 = vmatprep.subr.bf16.mxu0 %v2325_v42 }
  0x7d   : > { %1330 = vmatprep.subr.bf16.mxu1 %v2327_v45 }
  0x7f   : > { %1218 = vmatpush1.bf16.msra.mxu0 %v2329_v46 }
  0x80   : > { %1331 = vmatpush1.bf16.msra.mxu1 %v2330_v47  ;;  %1219 = vmatprep.subr.bf16.mxu0 %v2331_v48 }
  0x81   : > { %1332 = vmatprep.subr.bf16.mxu1 %v2333_v49 }
  0x83   : > { %1220 = vmatpush1.bf16.msra.mxu0 %v2335_v50 }
  0x84   : > { %1333 = vmatpush1.bf16.msra.mxu1 %v2336_v51  ;;  %1221 = vmatprep.subr.bf16.mxu0 %v2337_v52 }
  0x85   : > { %1334 = vmatprep.subr.bf16.mxu1 %v2339_v53 }
  0xe6   : > { %v270_v54 = vpop.xlane.xlu0 %269 }
  0xe7   : > { %v317_v55 = vmul.f32 0.00390625, %v270_v54  ;;  %v276_v56 = vpop.xlane.xlu1 %275 }
  0xe8   : > { %v319_v57 = vmul.f32 0.00390625, %v276_v56 }
  0xe9   : > { %v2905_v58 = vsub.f32 %v2777_v0, %v317_v55  ;;  %v2908_v59 = vsub.f32 %v2780_v1, %v317_v55 }
  0xea   : > { %v2911_v60 = vsub.f32 %v2783_v2, %v319_v57  ;;  %v2914_v61 = vsub.f32 %v2788_v4, %v319_v57  ;;  %v273_v62 = vpop.xlane.xlu0 %272 }
  0xeb   : > { %v318_v63 = vmul.f32 0.00390625, %v273_v62  ;;  %v279_v3 = vpop.xlane.xlu1 %278  ;;  %v365_v7 = vmul.f32 %v2905_v58, %v2905_v58  ;;  %v366_v10 = vmul.f32 %v2908_v59, %v2908_v59 }
  0xec   : > { %v320_v0 = vmul.f32 0.00390625, %v279_v3  ;;  %v369_v1 = vmul.f32 %v2911_v60, %v2911_v60  ;;  %v370_v2 = vmul.f32 %v2914_v61, %v2914_v61 }
  0xed   : > { %v2925_v11 = vsub.f32 %v2791_v5, %v318_v63  ;;  %v2928_v4 = vsub.f32 %v2794_v6, %v318_v63  ;;  %v397_v16 = vadd.f32 %v366_v10, %v365_v7 }
  0xee   : > { %v2931_v17 = vsub.f32 %v2799_v8, %v320_v0  ;;  %v2934_v24 = vsub.f32 %v2802_v9, %v320_v0  ;;  %v282_v27 = vpop.xlane.xlu0 %281  ;;  %v403_v36 = vadd.f32 %v370_v2, %v369_v1 }
  0xef   : > { %v321_v30 = vmul.f32 0.00390625, %v282_v27  ;;  %398 = vadd.xlane.f32.xlu0 %v397_v16  ;;  %v285_v33 = vpop.xlane.xlu1 %284  ;;  %v367_v39 = vmul.f32 %v2925_v11, %v2925_v11  ;;  %v368_v5 = vmul.f32 %v2928_v4, %v2928_v4 }
  0xf0   : > { %v322_v6 = vmul.f32 0.00390625, %v285_v33  ;;  %v371_v42 = vmul.f32 %v2931_v17, %v2931_v17  ;;  %v372_v8 = vmul.f32 %v2934_v24, %v2934_v24 }
  0xf1   : > { %v2945_v9 = vsub.f32 %v2809_v12, %v321_v30  ;;  %v2948_v45 = vsub.f32 %v2812_v13, %v321_v30  ;;  %v400_v46 = vadd.f32 %v368_v5, %v367_v39 }
  0xf2   : > { %v2951_v47 = vsub.f32 %v2815_v14, %v322_v6  ;;  %v2954_v48 = vsub.f32 %v2818_v15, %v322_v6  ;;  %v288_v49 = vpop.xlane.xlu0 %287  ;;  %v406_v52 = vadd.f32 %v372_v8, %v371_v42  ;;  %v2341_v42 = vld [vmem:[#allocation5 + $0x1b0] ss:$24 sps:$4 sm:$0xff]  }
  0xf3   : > { %v323_v50 = vmul.f32 0.00390625, %v288_v49  ;;  %404 = vadd.xlane.f32.xlu0 %v403_v36  ;;  %401 = vadd.xlane.f32.xlu1 %v400_v46  ;;  %v291_v51 = vpop.xlane.xlu1 %290  ;;  %v373_v12 = vmul.f32 %v2945_v9, %v2945_v9  ;;  %v374_v13 = vmul.f32 %v2948_v45, %v2948_v45  ;;  %v2342_v8 = vld [vmem:[#allocation5 + $0x1b8] ss:$24 sps:$4 sm:$0xff]  }
  0xf4   : > { %v324_v53 = vmul.f32 0.00390625, %v291_v51  ;;  %v375_v14 = vmul.f32 %v2951_v47, %v2951_v47  ;;  %v376_v15 = vmul.f32 %v2954_v48, %v2954_v48  ;;  %1222 = vmatpush1.bf16.msra.mxu0 %v2341_v42  ;;  %1335 = vmatpush1.bf16.msra.mxu1 %v2342_v8  ;;  %v2354_v42 = vld [vmem:[#allocation5 + $0x218] ss:$24 sps:$4 sm:$0xff]  }
  0xf5   : > { %v2965_v54 = vsub.f32 %v2825_v18, %v323_v50  ;;  %v2968_v55 = vsub.f32 %v2828_v19, %v323_v50  ;;  %v409_v56 = vadd.f32 %v374_v13, %v373_v12 }
  0xf6   : > { %v2971_v57 = vsub.f32 %v2831_v20, %v324_v53  ;;  %v2974_v62 = vsub.f32 %v2834_v21, %v324_v53  ;;  %v294_v63 = vpop.xlane.xlu0 %293  ;;  %v412_v10 = vadd.f32 %v376_v15, %v375_v14  ;;  %v2343_v15 = vld [vmem:[#allocation5 + $0x1e4] ss:$24 sps:$4 sm:$0xff]  }
  0xf7   : > { %v325_v3 = vmul.f32 0.00390625, %v294_v63  ;;  %407 = vadd.xlane.f32.xlu1 %v406_v52  ;;  %410 = vadd.xlane.f32.xlu0 %v409_v56  ;;  %v297_v7 = vpop.xlane.xlu1 %296  ;;  %v377_v18 = vmul.f32 %v2965_v54, %v2965_v54  ;;  %v378_v19 = vmul.f32 %v2968_v55, %v2968_v55 }
  0xf8   : > { %v326_v0 = vmul.f32 0.00390625, %v297_v7  ;;  %v379_v20 = vmul.f32 %v2971_v57, %v2971_v57  ;;  %v380_v21 = vmul.f32 %v2974_v62, %v2974_v62  ;;  %1223 = vmatprep.subr.bf16.mxu0 %v2343_v15 }
  0xf9   : > { %v2985_v1 = vsub.f32 %v2837_v22, %v325_v3  ;;  %v2988_v2 = vsub.f32 %v2840_v23, %v325_v3  ;;  %v415_v16 = vadd.f32 %v378_v19, %v377_v18  ;;  %v2347_v18 = vld [vmem:[#allocation5 + $0x1e0] ss:$24 sps:$4 sm:$0xff]  }
  0xfa   : > { %v2991_v27 = vsub.f32 %v2845_v25, %v326_v0  ;;  %v2994_v30 = vsub.f32 %v2848_v26, %v326_v0  ;;  %v300_v33 = vpop.xlane.xlu0 %299  ;;  %v418_v5 = vadd.f32 %v380_v21, %v379_v20  ;;  %v2348_v19 = vld [vmem:[#allocation5 + $0x1e8] ss:$24 sps:$4 sm:$0xff]   ;;  %1224 = vmatpush1.bf16.msra.mxu0 %v2347_v18  ;;  %v2369_v18 = vld [vmem:[#allocation5 + $0x2ac] ss:$24 sps:$4 sm:$0xff]  }
  0xfb   : > { %v327_v36 = vmul.f32 0.00390625, %v300_v33  ;;  %413 = vadd.xlane.f32.xlu1 %v412_v10  ;;  %416 = vadd.xlane.f32.xlu0 %v415_v16  ;;  %v303_v39 = vpop.xlane.xlu1 %302  ;;  %v381_v22 = vmul.f32 %v2985_v1, %v2985_v1  ;;  %v382_v23 = vmul.f32 %v2988_v2, %v2988_v2 }
  0xfc   : > { %v328_v6 = vmul.f32 0.00390625, %v303_v39  ;;  %v383_v25 = vmul.f32 %v2991_v27, %v2991_v27  ;;  %v384_v26 = vmul.f32 %v2994_v30, %v2994_v30 }
  0xfd   : > { %v3005_v46 = vsub.f32 %v2853_v28, %v327_v36  ;;  %v3008_v49 = vsub.f32 %v2856_v29, %v327_v36  ;;  %v421_v50 = vadd.f32 %v382_v23, %v381_v22  ;;  %v2351_v22 = vld [vmem:[#allocation5 + $0x21c] ss:$24 sps:$4 sm:$0xff]  }
  0xfe   : > { %v3011_v51 = vsub.f32 %v2861_v31, %v328_v6  ;;  %v3014_v52 = vsub.f32 %v2864_v32, %v328_v6  ;;  %v306_v12 = vpop.xlane.xlu0 %305  ;;  %v424_v14 = vadd.f32 %v384_v26, %v383_v25  ;;  %v2345_v31 = vld [vmem:[#allocation5 + $0x1ec] ss:$24 sps:$4 sm:$0xff]   ;;  %v2353_v26 = vld [vmem:[#allocation5 + $0x210] ss:$24 sps:$4 sm:$0xff]  }
  0xff   : > { %v329_v13 = vmul.f32 0.00390625, %v306_v12  ;;  %419 = vadd.xlane.f32.xlu1 %v418_v5  ;;  %422 = vadd.xlane.f32.xlu0 %v421_v50  ;;  %v309_v53 = vpop.xlane.xlu1 %308  ;;  %v385_v28 = vmul.f32 %v3005_v46, %v3005_v46  ;;  %v386_v29 = vmul.f32 %v3008_v49, %v3008_v49  ;;  %v2349_v5 = vld [vmem:[#allocation5 + $0x214] ss:$24 sps:$4 sm:$0xff]  }
 0x100   : > { %v330_v56 = vmul.f32 0.00390625, %v309_v53  ;;  %v387_v32 = vmul.f32 %v3011_v51, %v3011_v51  ;;  %v388_v63 = vmul.f32 %v3014_v52, %v3014_v52  ;;  %1336 = vmatprep.subr.bf16.mxu1 %v2345_v31  ;;  %1225 = vmatprep.subr.bf16.mxu0 %v2349_v5  ;;  %v2357_v53 = vld [vmem:[#allocation5 + $0x24c] ss:$24 sps:$4 sm:$0xff]  }
 0x101   : > { %v3025_v3 = vsub.f32 %v2869_v34, %v329_v13  ;;  %v3028_v7 = vsub.f32 %v2872_v35, %v329_v13  ;;  %v427_v10 = vadd.f32 %v386_v29, %v385_v28  ;;  %1337 = vmatpush1.bf16.msra.mxu1 %v2348_v19  ;;  %1226 = vmatpush1.bf16.msra.mxu0 %v2353_v26  ;;  %v2359_v28 = vld [vmem:[#allocation5 + $0x240] ss:$24 sps:$4 sm:$0xff]   ;;  %v2361_v31 = vld [vmem:[#allocation5 + $0x274] ss:$24 sps:$4 sm:$0xff]  }
 0x102   : > { %v3031_v0 = vsub.f32 %v2877_v37, %v330_v56  ;;  %v3034_v20 = vsub.f32 %v2880_v38, %v330_v56  ;;  %v312_v21 = vpop.xlane.xlu0 %311  ;;  %v430_v33 = vadd.f32 %v388_v63, %v387_v32  ;;  %1338 = vmatprep.subr.bf16.mxu1 %v2351_v22  ;;  %v2360_v29 = vld [vmem:[#allocation5 + $0x248] ss:$24 sps:$4 sm:$0xff]   ;;  %v2363_v56 = vld [vmem:[#allocation5 + $0x27c] ss:$24 sps:$4 sm:$0xff]   ;;  %v2366_v63 = vld [vmem:[#allocation5 + $0x278] ss:$24 sps:$4 sm:$0xff]  }
 0x103   : > { %v331_v16 = vmul.f32 0.00390625, %v312_v21  ;;  %425 = vadd.xlane.f32.xlu1 %v424_v14  ;;  %428 = vadd.xlane.f32.xlu0 %v427_v10  ;;  %v315_v34 = vpop.xlane.xlu1 %314  ;;  %v389_v35 = vmul.f32 %v3025_v3, %v3025_v3  ;;  %v390_v36 = vmul.f32 %v3028_v7, %v3028_v7  ;;  %v2365_v32 = vld [vmem:[#allocation5 + $0x270] ss:$24 sps:$4 sm:$0xff]   ;;  %v2367_v10 = vld [vmem:[#allocation5 + $0x2a4] ss:$24 sps:$4 sm:$0xff]  }
 0x104   : > { %v332_v39 = vmul.f32 0.00390625, %v315_v34  ;;  %v391_v37 = vmul.f32 %v3031_v0, %v3031_v0  ;;  %v392_v38 = vmul.f32 %v3034_v20, %v3034_v20  ;;  %v2371_v19 = vld [vmem:[#allocation5 + $0x2a0] ss:$24 sps:$4 sm:$0xff]   ;;  %v2375_v34 = vld [vmem:[#allocation5 + $0x2dc] ss:$24 sps:$4 sm:$0xff]  }
 0x105   : > { %v3045_v23 = vsub.f32 %v2885_v40, %v331_v16  ;;  %v3048_v6 = vsub.f32 %v2888_v41, %v331_v16  ;;  %v433_v25 = vadd.f32 %v390_v36, %v389_v35  ;;  %1339 = vmatpush1.bf16.msra.mxu1 %v2354_v42  ;;  %v2372_v21 = vld [vmem:[#allocation5 + $0x2a8] ss:$24 sps:$4 sm:$0xff]   ;;  %v2373_v16 = vld [vmem:[#allocation5 + $0x2d4] ss:$24 sps:$4 sm:$0xff]   ;;  %v2378_v35 = vld [vmem:[#allocation5 + $0x2d8] ss:$24 sps:$4 sm:$0xff]  }
 0x106   : > { %v3051_v8 = vsub.f32 %v2893_v43, %v332_v39  ;;  %v3054_v50 = vsub.f32 %v2896_v44, %v332_v39  ;;  %v436_v12 = vadd.f32 %v392_v38, %v391_v37  ;;  %v2355_v44 = vld [vmem:[#allocation5 + $0x244] ss:$24 sps:$4 sm:$0xff]   ;;  %1340 = vmatprep.subr.bf16.mxu1 %v2357_v53  ;;  %v2381_v36 = vld [vmem:[#allocation5 + $0x14] ss:$24 sps:$4 sm:$0xff]   ;;  %v526_v38 = vlaneseq }
 0x107   : > { %431 = vadd.xlane.f32.xlu1 %v430_v33  ;;  %434 = vadd.xlane.f32.xlu0 %v433_v25  ;;  %v393_v40 = vmul.f32 %v3045_v23, %v3045_v23  ;;  %v394_v41 = vmul.f32 %v3048_v6, %v3048_v6  ;;  %v2377_v33 = vld [vmem:[#allocation5 + $0x2d0] ss:$24 sps:$4 sm:$0xff]  }
 0x108   : > { %v395_v13 = vmul.f32 %v3051_v8, %v3051_v8  ;;  %v396_v43 = vmul.f32 %v3054_v50, %v3054_v50  ;;  %1227 = vmatprep.subr.bf16.mxu0 %v2355_v44 }
 0x109   : > { %v439_v14 = vadd.f32 %v394_v41, %v393_v40  ;;  %1228 = vmatpush1.bf16.msra.mxu0 %v2359_v28  ;;  %1341 = vmatpush1.bf16.msra.mxu1 %v2360_v29 }
 0x10a   : > { %v442_v15 = vadd.f32 %v396_v43, %v395_v13  ;;  %1229 = vmatprep.subr.bf16.mxu0 %v2361_v31  ;;  %1342 = vmatprep.subr.bf16.mxu1 %v2363_v56  ;;  %v266_v31 = vld [vmem:[%s3342_s1] sm:$0x3] }
 0x10b   : > { %437 = vadd.xlane.f32.xlu1 %v436_v12  ;;  %440 = vadd.xlane.f32.xlu0 %v439_v14  ;;  %v527_v12 = vshrl.u32 %v526_v38, 7 }
 0x10d   : > { %1230 = vmatpush1.bf16.msra.mxu0 %v2365_v32  ;;  %1343 = vmatpush1.bf16.msra.mxu1 %v2366_v63  ;;  %v532_v14 = vsub.s32 1, %v527_v12  ;;  %v528_v28 = vsub.s32 0, %v527_v12 }
 0x10e   : > { %1231 = vmatprep.subr.bf16.mxu0 %v2367_v10  ;;  %1344 = vmatprep.subr.bf16.mxu1 %v2369_v18 }
 0x10f   : > { %443 = vadd.xlane.f32.xlu1 %v442_v15  ;;  %v3067_v18 = vrot.slane %v266_v31, %v532_v14 }
 0x111   : > { %1232 = vmatpush1.bf16.msra.mxu0 %v2371_v19  ;;  %1345 = vmatpush1.bf16.msra.mxu1 %v2372_v21 }
 0x112   : > { %1233 = vmatprep.subr.bf16.mxu0 %v2373_v16  ;;  %1346 = vmatprep.subr.bf16.mxu1 %v2375_v34  ;;  %v267_v16 = vld [vmem:[%s3343_s2] sm:$0x3]  ;;  %v3072_v34 = vrot.slane %v266_v31, %v528_v28 }
 0x113   : > { %v3080_v12 = vrot.slane %v267_v16, %v528_v28 }
 0x115   : > { %1234 = vmatpush1.bf16.msra.mxu0 %v2377_v33  ;;  %1347 = vmatpush1.bf16.msra.mxu1 %v2378_v35 }
 0x116   : > { %1429 = vmatprep.subr.bf16.mxu0 %v2381_v36  ;;  %2186 = vmatprep.subr.bf16.mxu1 %v2381_v36 }
 0x17c   : > { %v399_v39 = vpop.xlane.xlu0 %398 }
 0x17d   : > { %v445_v37 = vmul.f32 0.00390625, %v399_v39 }
 0x17f   : > { %v461_v5 = vadd.f32 1e-05, %v445_v37 }
 0x180   : > { %v402_v22 = vpop.xlane.xlu1 %401  ;;  %v405_v25 = vpop.xlane.xlu0 %404 }
 0x181   : > { %2427 = vrsqrt.f32 %v461_v5  ;;  %v446_v26 = vmul.f32 0.00390625, %v402_v22  ;;  %v447_v42 = vmul.f32 0.00390625, %v405_v25  ;;  %v3077_v22 = vrot.slane %v267_v16, %v532_v14  ;;  %v2379_v16 = vld [vmem:[#allocation5 + $0x10] ss:$24 sps:$4 sm:$0xff]  }
 0x183   : > { %v462_v40 = vadd.f32 1e-05, %v446_v26  ;;  %v463_v41 = vadd.f32 1e-05, %v447_v42 }
 0x184   : > { %v408_v13 = vpop.xlane.xlu1 %407  ;;  %v411_v43 = vpop.xlane.xlu0 %410 }
 0x185   : > { %2429 = vrsqrt.f32 %v462_v40  ;;  %v448_v44 = vmul.f32 0.00390625, %v408_v13  ;;  %v449_v53 = vmul.f32 0.00390625, %v411_v43 }
 0x186   : > { %2431 = vrsqrt.f32 %v463_v41 }
 0x187   : > { %v464_v29 = vadd.f32 1e-05, %v448_v44  ;;  %v465_v15 = vadd.f32 1e-05, %v449_v53 }
 0x188   : > { %v414_v56 = vpop.xlane.xlu1 %413  ;;  %v417_v32 = vpop.xlane.xlu0 %416 }
 0x189   : > { %2433 = vrsqrt.f32 %v464_v29  ;;  %v450_v63 = vmul.f32 0.00390625, %v414_v56  ;;  %v451_v10 = vmul.f32 0.00390625, %v417_v32 }
 0x18a   : > { %2435 = vrsqrt.f32 %v465_v15 }
 0x18b   : > { %v2428_v19 = vpop.eup %2427  ;;  %v466_v21 = vadd.f32 1e-05, %v450_v63  ;;  %v467_v37 = vadd.f32 1e-05, %v451_v10 }
 0x18c   : > { %v420_v33 = vpop.xlane.xlu1 %419  ;;  %v494_v35 = vmul.f32 %v2428_v19, %v2908_v59  ;;  %v493_v36 = vmul.f32 %v2428_v19, %v2905_v58  ;;  %v423_v38 = vpop.xlane.xlu0 %422 }
 0x18d   : > { %2437 = vrsqrt.f32 %v466_v21  ;;  %v452_v39 = vmul.f32 0.00390625, %v420_v33  ;;  %v453_v13 = vmul.f32 0.00390625, %v423_v38  ;;  %v2384_v38 = vld [vmem:[#allocation5 + $0x44] ss:$24 sps:$4 sm:$0xff]  }
 0x18e   : > { %v537_v5 = vmul.f32 %v3067_v18, %v494_v35  ;;  %v536_v42 = vmul.f32 %v3072_v34, %v493_v36 }
 0x18f   : > { %v2430_v25 = vpop.eup %2429  ;;  %v468_v26 = vadd.f32 1e-05, %v452_v39  ;;  %v469_v19 = vadd.f32 1e-05, %v453_v13 }
 0x190   : > { %v2432_v40 = vpop.eup %2431  ;;  %v426_v41 = vpop.xlane.xlu1 %425  ;;  %v496_v59 = vmul.f32 %v2430_v25, %v2928_v4  ;;  %v495_v58 = vmul.f32 %v2430_v25, %v2925_v11  ;;  %v580_v14 = vadd.f32 %v3077_v22, %v537_v5  ;;  %v579_v31 = vadd.f32 %v3080_v12, %v536_v42 }
 0x191   : > { %2439 = vrsqrt.f32 %v468_v26  ;;  %v454_v43 = vmul.f32 0.00390625, %v426_v41  ;;  %v498_v44 = vmul.f32 %v2432_v40, %v2914_v61  ;;  %v497_v11 = vmul.f32 %v2432_v40, %v2911_v60  ;;  %v429_v60 = vpop.xlane.xlu0 %428 }
 0x192   : > { %2441 = vrsqrt.f32 %v467_v37  ;;  %v539_v53 = vmul.f32 %v3067_v18, %v496_v59  ;;  %v538_v29 = vmul.f32 %v3072_v34, %v495_v58  ;;  %v455_v40 = vmul.f32 0.00390625, %v429_v60  ;;  %v2382_v59 = vld [vmem:[#allocation5 + $0x40] ss:$24 sps:$4 sm:$0xff]  }
 0x193   : > { %v2434_v28 = vpop.eup %2433  ;;  %v470_v15 = vadd.f32 1e-05, %v454_v43  ;;  %v541_v4 = vmul.f32 %v3067_v18, %v498_v44  ;;  %v2387_v43 = vld [vmem:[#allocation5 + $0x74] ss:$24 sps:$4 sm:$0xff]   ;;  %v2388_v60 = vld [vmem:[#allocation5 + $0xa0] ss:$24 sps:$4 sm:$0xff]  }
 0x194   : > { %v582_v56 = vadd.f32 %v3077_v22, %v539_v53  ;;  %v581_v32 = vadd.f32 %v3080_v12, %v538_v29  ;;  %v500_v61 = vmul.f32 %v2434_v28, %v2934_v24  ;;  %v499_v63 = vmul.f32 %v2434_v28, %v2931_v17  ;;  %v2436_v10 = vpop.eup %2435  ;;  %v432_v21 = vpop.xlane.xlu1 %431 }
 0x195   : > { %2443 = vrsqrt.f32 %v470_v15  ;;  %v584_v37 = vadd.f32 %v3077_v22, %v541_v4  ;;  %v540_v24 = vmul.f32 %v3072_v34, %v497_v11  ;;  %v456_v5 = vmul.f32 0.00390625, %v432_v21  ;;  %v435_v28 = vpop.xlane.xlu0 %434 }
 0x196   : > { %v3095_v33 = vpack.c.bf16 %v582_v56, %v580_v14  ;;  %v3097_v35 = vpack.c.bf16 %v581_v32, %v579_v31  ;;  %v543_v36 = vmul.f32 %v3067_v18, %v500_v61  ;;  %v542_v17 = vmul.f32 %v3072_v34, %v499_v63  ;;  %v2385_v56 = vld [vmem:[#allocation5 + $0x70] ss:$24 sps:$4 sm:$0xff]  }
 0x197   : > { %v2438_v39 = vpop.eup %2437  ;;  %v502_v26 = vmul.f32 %v2436_v10, %v2948_v45  ;;  %2445 = vrsqrt.f32 %v469_v19  ;;  %v472_v53 = vadd.f32 1e-05, %v456_v5  ;;  %v583_v14 = vadd.f32 %v3080_v12, %v540_v24 }
 0x198   : > { %1235 = vmatprep.mubr.bf16.mxu0 %v3095_v33  ;;  %1348 = vmatprep.mubr.bf16.mxu1 %v3095_v33  ;;  %v586_v25 = vadd.f32 %v3077_v22, %v543_v36  ;;  %v504_v42 = vmul.f32 %v2438_v39, %v2954_v48  ;;  %v585_v58 = vadd.f32 %v3080_v12, %v542_v17  ;;  %v438_v15 = vpop.xlane.xlu1 %437  ;;  %v471_v11 = vadd.f32 1e-05, %v455_v40 }
 0x199   : > { %1236 = vmatmul.mubr.bf16.vlgmr.msra.gmra.mrb[0].mxu0 %v3097_v35  ;;  %1349 = vmatmul.mubr.bf16.vlgmr.msra.gmra.mrb[0].mxu1 %v3097_v35  ;;  %v545_v45 = vmul.f32 %v3067_v18, %v502_v26  ;;  %v503_v29 = vmul.f32 %v2438_v39, %v2951_v47  ;;  %v501_v4 = vmul.f32 %v2436_v10, %v2945_v9  ;;  %2447 = vrsqrt.f32 %v472_v53  ;;  %v2390_v9 = vld [vmem:[#allocation5 + $0xa4] ss:$24 sps:$4 sm:$0xff]  }
 0x19a   : > { %1430 = vmatpush1.bf16.msra.mxu0 %v2379_v16  ;;  %2202 = vmatpush1.bf16.msra.mxu1 %v2379_v16  ;;  %v3110_v41 = vpack.c.bf16 %v586_v25, %v584_v37  ;;  %v547_v48 = vmul.f32 %v3067_v18, %v504_v42  ;;  %v3121_v32 = vpack.c.bf16 %v585_v58, %v583_v14  ;;  %v457_v21 = vmul.f32 0.00390625, %v435_v28  ;;  %v2393_v37 = vld [vmem:[#allocation5 + $0xd4] ss:$24 sps:$4 sm:$0xff]  }
 0x19b   : > { %v2440_v13 = vpop.eup %2439  ;;  %1431 = vmatprep.subr.bf16.mxu0 %v2384_v38  ;;  %2187 = vmatprep.subr.bf16.mxu1 %v2384_v38  ;;  %v588_v63 = vadd.f32 %v3077_v22, %v545_v45  ;;  %v546_v47 = vmul.f32 %v3072_v34, %v503_v29  ;;  %v458_v16 = vmul.f32 0.00390625, %v438_v15  ;;  %2449 = vrsqrt.f32 %v471_v11  ;;  %v2396_v29 = vld [vmem:[#allocation5 + $0x104] ss:$24 sps:$4 sm:$0xff]   ;;  %v2394_v15 = vld [vmem:[#allocation5 + $0x100] ss:$24 sps:$4 sm:$0xff]  }
 0x19c   : > { %v2442_v44 = vpop.eup %2441  ;;  %1245 = vmatprep.mubr.bf16.mxu0 %v3110_v41  ;;  %1358 = vmatprep.mubr.bf16.mxu1 %v3110_v41  ;;  %v590_v31 = vadd.f32 %v3077_v22, %v547_v48  ;;  %v508_v61 = vmul.f32 %v2440_v13, %v2974_v62  ;;  %v544_v62 = vmul.f32 %v3072_v34, %v501_v4  ;;  %v473_v5 = vadd.f32 1e-05, %v457_v21  ;;  %v444_v26 = vpop.xlane.xlu1 %443  ;;  %v2399_v4 = vld [vmem:[#allocation5 + $0x134] ss:$24 sps:$4 sm:$0xff]  }
 0x19d   : > { %v506_v19 = vmul.f32 %v2442_v44, %v2968_v55  ;;  %v589_v38 = vadd.f32 %v3080_v12, %v546_v47  ;;  %v507_v17 = vmul.f32 %v2440_v13, %v2971_v57  ;;  %v474_v25 = vadd.f32 1e-05, %v458_v16  ;;  %v441_v48 = vpop.xlane.xlu0 %440 }
 0x19e   : > { %1432 = vmatpush1.bf16.msra.mxu0 %v2382_v59  ;;  %2203 = vmatpush1.bf16.msra.mxu1 %v2382_v59  ;;  %v3129_v36 = vpack.c.bf16 %v590_v31, %v588_v63  ;;  %v551_v39 = vmul.f32 %v3067_v18, %v508_v61  ;;  %v587_v42 = vadd.f32 %v3080_v12, %v544_v62  ;;  %v460_v14 = vmul.f32 0.00390625, %v444_v26  ;;  %v2397_v62 = vld [vmem:[#allocation5 + $0x130] ss:$24 sps:$4 sm:$0xff]  }
 0x19f   : > { %1433 = vmatprep.subr.bf16.mxu0 %v2387_v43  ;;  %2188 = vmatprep.subr.bf16.mxu1 %v2387_v43  ;;  %v2444_v10 = vpop.eup %2443  ;;  %v549_v24 = vmul.f32 %v3067_v18, %v506_v19  ;;  %v505_v59 = vmul.f32 %v2442_v44, %v2965_v54  ;;  %v2391_v43 = vld [vmem:[#allocation5 + $0xd0] ss:$24 sps:$4 sm:$0xff]   ;;  %v550_v53 = vmul.f32 %v3072_v34, %v507_v17  ;;  %2451 = vrsqrt.f32 %v474_v25 }
 0x1a0   : > { %v594_v40 = vadd.f32 %v3077_v22, %v551_v39  ;;  %v512_v58 = vmul.f32 %v2444_v10, %v2994_v30  ;;  %v3143_v57 = vpack.c.bf16 %v589_v38, %v587_v42  ;;  %2453 = vrsqrt.f32 %v473_v5 }
 0x1a1   : > { %1246 = vmatmul.mubr.bf16.gmra.mrb[4].mxu0 %v3121_v32  ;;  %1359 = vmatmul.mubr.bf16.gmra.mrb[4].mxu1 %v3121_v32  ;;  %v2446_v55 = vpop.eup %2445  ;;  %v592_v13 = vadd.f32 %v3077_v22, %v549_v24  ;;  %v459_v28 = vmul.f32 0.00390625, %v441_v48  ;;  %v593_v11 = vadd.f32 %v3080_v12, %v550_v53  ;;  %v476_v63 = vadd.f32 1e-05, %v460_v14  ;;  %v2400_v24 = vld [vmem:[#allocation5 + $0x160] ss:$24 sps:$4 sm:$0xff]  }
 0x1a2   : > { %1434 = vmatpush1.bf16.msra.mxu0 %v2385_v56  ;;  %2204 = vmatpush1.bf16.msra.mxu1 %v2385_v56  ;;  %v510_v45 = vmul.f32 %v2446_v55, %v2988_v2  ;;  %v548_v2 = vmul.f32 %v3072_v34, %v505_v59  ;;  %v555_v30 = vmul.f32 %v3067_v18, %v512_v58  ;;  %v2408_v53 = vld [vmem:[#allocation5 + $0x1c4] ss:$24 sps:$4 sm:$0xff]  }
 0x1a3   : > { %1255 = vmatprep.mubr.bf16.mxu0 %v3129_v36  ;;  %1368 = vmatprep.mubr.bf16.mxu1 %v3129_v36  ;;  %v3149_v54 = vpack.c.bf16 %v594_v40, %v592_v13  ;;  %v2448_v44 = vpop.eup %2447  ;;  %v511_v56 = vmul.f32 %v2444_v10, %v2991_v27  ;;  %v509_v21 = vmul.f32 %v2446_v55, %v2985_v1  ;;  %2455 = vrsqrt.f32 %v476_v63 }
 0x1a4   : > { %1435 = vmatprep.subr.bf16.mxu0 %v2390_v9  ;;  %2189 = vmatprep.subr.bf16.mxu1 %v2390_v9  ;;  %v553_v31 = vmul.f32 %v3067_v18, %v510_v45  ;;  %v591_v47 = vadd.f32 %v3080_v12, %v548_v2  ;;  %v598_v19 = vadd.f32 %v3077_v22, %v555_v30  ;;  %v475_v9 = vadd.f32 1e-05, %v459_v28  ;;  %v2411_v30 = vld [vmem:[#allocation5 + $0x1f4] ss:$24 sps:$4 sm:$0xff]  }
 0x1a5   : > { %v2450_v61 = vpop.eup %2449  ;;  %v516_v16 = vmul.f32 %v2448_v44, %v3014_v52  ;;  %v554_v10 = vmul.f32 %v3072_v34, %v511_v56  ;;  %v552_v52 = vmul.f32 %v3072_v34, %v509_v21  ;;  %v515_v26 = vmul.f32 %v2448_v44, %v3011_v51  ;;  %v2414_v21 = vld [vmem:[#allocation5 + $0x224] ss:$24 sps:$4 sm:$0xff]  }
 0x1a6   : > { %1436 = vmatpush1.bf16.msra.mxu0 %v2388_v60  ;;  %2205 = vmatpush1.bf16.msra.mxu1 %v2388_v60  ;;  %v596_v39 = vadd.f32 %v3077_v22, %v553_v31  ;;  %v3163_v27 = vpack.c.bf16 %v593_v11, %v591_v47  ;;  %v514_v60 = vmul.f32 %v2450_v61, %v3008_v49  ;;  %2457 = vrsqrt.f32 %v475_v9  ;;  %v2405_v49 = vld [vmem:[#allocation5 + $0x194] ss:$24 sps:$4 sm:$0xff]   ;;  %v2412_v9 = vld [vmem:[#allocation5 + $0x220] ss:$24 sps:$4 sm:$0xff]  }
 0x1a7   : > { %1437 = vmatprep.subr.bf16.mxu0 %v2393_v37  ;;  %2190 = vmatprep.subr.bf16.mxu1 %v2393_v37  ;;  %v2402_v37 = vld [vmem:[#allocation5 + $0x164] ss:$24 sps:$4 sm:$0xff]   ;;  %v559_v55 = vmul.f32 %v3067_v18, %v516_v16  ;;  %v597_v5 = vadd.f32 %v3080_v12, %v554_v10  ;;  %v595_v42 = vadd.f32 %v3080_v12, %v552_v52 }
 0x1a8   : > { %v3169_v1 = vpack.c.bf16 %v598_v19, %v596_v39  ;;  %v557_v25 = vmul.f32 %v3067_v18, %v514_v60  ;;  %v513_v59 = vmul.f32 %v2450_v61, %v3005_v46  ;;  %v558_v13 = vmul.f32 %v3072_v34, %v515_v26  ;;  %v2409_v61 = vld [vmem:[#allocation5 + $0x1f0] ss:$24 sps:$4 sm:$0xff]  }
 0x1a9   : > { %1256 = vmatmul.mubr.bf16.gmra.mrb[8].mxu0 %v3143_v57  ;;  %1369 = vmatmul.mubr.bf16.gmra.mrb[8].mxu1 %v3143_v57  ;;  %v2452_v38 = vpop.eup %2451  ;;  %v602_v40 = vadd.f32 %v3077_v22, %v559_v55  ;;  %v3183_v48 = vpack.c.bf16 %v597_v5, %v595_v42  ;;  %v2415_v55 = vld [vmem:[#allocation5 + $0x250] ss:$24 sps:$4 sm:$0xff]   ;;  %v2418_v5 = vld [vmem:[#allocation5 + $0x280] ss:$24 sps:$4 sm:$0xff]  }
 0x1aa   : > { %1438 = vmatpush1.bf16.msra.mxu0 %v2391_v43  ;;  %2206 = vmatpush1.bf16.msra.mxu1 %v2391_v43  ;;  %v2454_v17 = vpop.eup %2453  ;;  %v520_v58 = vmul.f32 %v2452_v38, %v3034_v20  ;;  %v2403_v43 = vld [vmem:[#allocation5 + $0x190] ss:$24 sps:$4 sm:$0xff]   ;;  %v600_v51 = vadd.f32 %v3077_v22, %v557_v25  ;;  %v556_v20 = vmul.f32 %v3072_v34, %v513_v59 }
 0x1ab   : > { %1265 = vmatprep.mubr.bf16.mxu0 %v3149_v54  ;;  %1378 = vmatprep.mubr.bf16.mxu1 %v3149_v54  ;;  %v518_v45 = vmul.f32 %v2454_v17, %v3028_v7  ;;  %v601_v44 = vadd.f32 %v3080_v12, %v558_v13  ;;  %v519_v28 = vmul.f32 %v2452_v38, %v3031_v0  ;;  %v2421_v26 = vld [vmem:[#allocation5 + $0x2b0] ss:$24 sps:$4 sm:$0xff]  }
 0x1ac   : > { %1439 = vmatprep.subr.bf16.mxu0 %v2396_v29  ;;  %2191 = vmatprep.subr.bf16.mxu1 %v2396_v29  ;;  %v3189_v46 = vpack.c.bf16 %v602_v40, %v600_v51  ;;  %v563_v14 = vmul.f32 %v3067_v18, %v520_v58  ;;  %v2406_v29 = vld [vmem:[#allocation5 + $0x1c0] ss:$24 sps:$4 sm:$0xff]   ;;  %v599_v31 = vadd.f32 %v3080_v12, %v556_v20  ;;  %v2426_v40 = vld [vmem:[#allocation5 + $0x2e4] ss:$24 sps:$4 sm:$0xff]  }
 0x1ad   : > { %v2456_v7 = vpop.eup %2455  ;;  %v561_v2 = vmul.f32 %v3067_v18, %v518_v45  ;;  %v517_v11 = vmul.f32 %v2454_v17, %v3025_v3  ;;  %v562_v0 = vmul.f32 %v3072_v34, %v519_v28  ;;  %v2420_v17 = vld [vmem:[#allocation5 + $0x284] ss:$24 sps:$4 sm:$0xff]  }
 0x1ae   : > { %1440 = vmatpush1.bf16.msra.mxu0 %v2394_v15  ;;  %2207 = vmatpush1.bf16.msra.mxu1 %v2394_v15  ;;  %v524_v56 = vmul.f32 %v2456_v7, %v3054_v50  ;;  %v3203_v47 = vpack.c.bf16 %v601_v44, %v599_v31  ;;  %v523_v10 = vmul.f32 %v2456_v7, %v3051_v8 }
 0x1af   : > { %1441 = vmatprep.subr.bf16.mxu0 %v2399_v4  ;;  %2192 = vmatprep.subr.bf16.mxu1 %v2399_v4  ;;  %v606_v4 = vadd.f32 %v3077_v22, %v563_v14  ;;  %v604_v63 = vadd.f32 %v3077_v22, %v561_v2  ;;  %v560_v50 = vmul.f32 %v3072_v34, %v517_v11 }
 0x1b0   : > { %v2458_v15 = vpop.eup %2457  ;;  %v567_v16 = vmul.f32 %v3067_v18, %v524_v56 }
 0x1b1   : > { %1266 = vmatmul.mubr.bf16.gmra.mrb[12].mxu0 %v3163_v27  ;;  %1379 = vmatmul.mubr.bf16.gmra.mrb[12].mxu1 %v3163_v27  ;;  %v522_v19 = vmul.f32 %v2458_v15, %v3048_v6  ;;  %v3209_v3 = vpack.c.bf16 %v606_v4, %v604_v63  ;;  %v605_v6 = vadd.f32 %v3080_v12, %v562_v0 }
 0x1b2   : > { %1442 = vmatpush1.bf16.msra.mxu0 %v2397_v62  ;;  %2208 = vmatpush1.bf16.msra.mxu1 %v2397_v62  ;;  %v2417_v62 = vld [vmem:[#allocation5 + $0x254] ss:$24 sps:$4 sm:$0xff]   ;;  %v603_v60 = vadd.f32 %v3080_v12, %v560_v50  ;;  %v521_v52 = vmul.f32 %v2458_v15, %v3045_v23 }
 0x1b3   : > { %1275 = vmatprep.mubr.bf16.mxu0 %v3169_v1  ;;  %1388 = vmatprep.mubr.bf16.mxu1 %v3169_v1  ;;  %v565_v39 = vmul.f32 %v3067_v18, %v522_v19  ;;  %v566_v18 = vmul.f32 %v3072_v34, %v523_v10  ;;  %v2423_v23 = vld [vmem:[#allocation5 + $0x2b4] ss:$24 sps:$4 sm:$0xff]  }
 0x1b4   : > { %1443 = vmatprep.subr.bf16.mxu0 %v2402_v37  ;;  %2193 = vmatprep.subr.bf16.mxu1 %v2402_v37  ;;  %v610_v37 = vadd.f32 %v3077_v22, %v567_v16  ;;  %v623_v38 = vpack.c.bf16 %v605_v6, %v603_v60 }
 0x1b5   : > { %v609_v25 = vadd.f32 %v3080_v12, %v566_v18 }
 0x1b6   : > { %1444 = vmatpush1.bf16.msra.mxu0 %v2400_v24  ;;  %2209 = vmatpush1.bf16.msra.mxu1 %v2400_v24  ;;  %v608_v24 = vadd.f32 %v3077_v22, %v565_v39 }
 0x1b7   : > { %1445 = vmatprep.subr.bf16.mxu0 %v2405_v49  ;;  %2194 = vmatprep.subr.bf16.mxu1 %v2405_v49  ;;  %v564_v49 = vmul.f32 %v3072_v34, %v521_v52  ;;  %v2424_v34 = vld [vmem:[#allocation5 + $0x2e0] ss:$24 sps:$4 sm:$0xff]  }
 0x1b8   : > { %v626_v8 = vpack.c.bf16 %v610_v37, %v608_v24 }
 0x1b9   : > { %1276 = vmatmul.mubr.bf16.gmra.mrb[16].mxu0 %v3183_v48  ;;  %1389 = vmatmul.mubr.bf16.gmra.mrb[16].mxu1 %v3183_v48  ;;  %v607_v22 = vadd.f32 %v3080_v12, %v564_v49 }
 0x1ba   : > { %1446 = vmatpush1.bf16.msra.mxu0 %v2403_v43  ;;  %2210 = vmatpush1.bf16.msra.mxu1 %v2403_v43 }
 0x1bb   : > { %1285 = vmatprep.mubr.bf16.mxu0 %v3189_v46  ;;  %1398 = vmatprep.mubr.bf16.mxu1 %v3189_v46  ;;  %v625_v42 = vpack.c.bf16 %v609_v25, %v607_v22 }
 0x1bc   : > { %1447 = vmatprep.subr.bf16.mxu0 %v2408_v53  ;;  %2195 = vmatprep.subr.bf16.mxu1 %v2408_v53 }
 0x1be   : > { %1448 = vmatpush1.bf16.msra.mxu0 %v2406_v29  ;;  %2211 = vmatpush1.bf16.msra.mxu1 %v2406_v29 }
 0x1bf   : > { %1449 = vmatprep.subr.bf16.mxu0 %v2411_v30  ;;  %2196 = vmatprep.subr.bf16.mxu1 %v2411_v30 }
 0x1c1   : > { %1286 = vmatmul.mubr.bf16.gmra.mrb[20].mxu0 %v3203_v47  ;;  %1399 = vmatmul.mubr.bf16.gmra.mrb[20].mxu1 %v3203_v47 }
 0x1c2   : > { %1450 = vmatpush1.bf16.msra.mxu0 %v2409_v61  ;;  %2212 = vmatpush1.bf16.msra.mxu1 %v2409_v61 }
 0x1c3   : > { %1295 = vmatprep.mubr.bf16.mxu0 %v3209_v3  ;;  %1408 = vmatprep.mubr.bf16.mxu1 %v3209_v3 }
 0x1c4   : > { %1451 = vmatprep.subr.bf16.mxu0 %v2414_v21  ;;  %2197 = vmatprep.subr.bf16.mxu1 %v2414_v21 }
 0x1c6   : > { %1452 = vmatpush1.bf16.msra.mxu0 %v2412_v9  ;;  %2213 = vmatpush1.bf16.msra.mxu1 %v2412_v9 }
 0x1c7   : > { %1453 = vmatprep.subr.bf16.mxu0 %v2417_v62  ;;  %2198 = vmatprep.subr.bf16.mxu1 %v2417_v62 }
 0x1c9   : > { %1296 = vmatmul.mubr.bf16.gmra.mrb[24].mxu0 %v623_v38  ;;  %1409 = vmatmul.mubr.bf16.gmra.mrb[24].mxu1 %v623_v38 }
 0x1ca   : > { %1454 = vmatpush1.bf16.msra.mxu0 %v2415_v55  ;;  %2214 = vmatpush1.bf16.msra.mxu1 %v2415_v55 }
 0x1cb   : > { %1305 = vmatprep.mubr.bf16.mxu0 %v626_v8  ;;  %1418 = vmatprep.mubr.bf16.mxu1 %v626_v8 }
 0x1cc   : > { %1455 = vmatprep.subr.bf16.mxu0 %v2420_v17  ;;  %2199 = vmatprep.subr.bf16.mxu1 %v2420_v17 }
 0x1ce   : > { %1456 = vmatpush1.bf16.msra.mxu0 %v2418_v5  ;;  %2215 = vmatpush1.bf16.msra.mxu1 %v2418_v5 }
 0x1cf   : > { %1457 = vmatprep.subr.bf16.mxu0 %v2423_v23  ;;  %2200 = vmatprep.subr.bf16.mxu1 %v2423_v23 }
 0x1d1   : > { %1306 = vmatmul.mubr.bf16.gmra.mrb[28].mxu0 %v625_v42  ;;  %1419 = vmatmul.mubr.bf16.gmra.mrb[28].mxu1 %v625_v42 }
 0x1d2   : > { %1458 = vmatpush1.bf16.msra.mxu0 %v2421_v26  ;;  %2216 = vmatpush1.bf16.msra.mxu1 %v2421_v26 }
 0x1d3   : > { %1461 = vmatprep.mubr.bf16.mxu0 %v3095_v33  ;;  %1501 = vmatprep.mubr.bf16.mxu1 %v3169_v1 }
 0x1d4   : > { %1459 = vmatprep.subr.bf16.mxu0 %v2426_v40  ;;  %2201 = vmatprep.subr.bf16.mxu1 %v2426_v40 }
 0x1d6   : > { %1460 = vmatpush1.bf16.msra.mxu0 %v2424_v34  ;;  %2217 = vmatpush1.bf16.msra.mxu1 %v2424_v34 }
 0x1d9   : > { %1462 = vmatmul.mubr.bf16.vlgmr.msra.gmra.mrb[32].mxu0 %v3097_v35  ;;  %1502 = vmatmul.mubr.bf16.vlgmr.msra.gmra.mrb[32].mxu1 %v3183_v48 }
 0x1da   : > { %1471 = vmatprep.mubr.bf16.mxu0 %v3110_v41  ;;  %1511 = vmatprep.mubr.bf16.mxu1 %v3189_v46 }
 0x1e1   : > { %1472 = vmatmul.mubr.bf16.gmra.mrb[36].mxu0 %v3121_v32  ;;  %1512 = vmatmul.mubr.bf16.gmra.mrb[36].mxu1 %v3203_v47 }
 0x1e2   : > { %1481 = vmatprep.mubr.bf16.mxu0 %v3129_v36  ;;  %1521 = vmatprep.mubr.bf16.mxu1 %v3209_v3 }
 0x1e9   : > { %1482 = vmatmul.mubr.bf16.gmra.mrb[40].mxu0 %v3143_v57  ;;  %1522 = vmatmul.mubr.bf16.gmra.mrb[40].mxu1 %v623_v38 }
 0x1ea   : > { %1491 = vmatprep.mubr.bf16.mxu0 %v3149_v54  ;;  %1531 = vmatprep.mubr.bf16.mxu1 %v626_v8 }
 0x1f1   : > { %1492 = vmatmul.mubr.bf16.gmra.mrb[44].mxu0 %v3163_v27  ;;  %1532 = vmatmul.mubr.bf16.gmra.mrb[44].mxu1 %v625_v42 }
 0x26c   : > { %v1237_v12 = vpop.f32.mrb[0].mxu0  ;;  %v1350_v33 = vpop.f32.mrb[0].mxu1 }
 0x26d   : > { %v1239_v35 = vpop.f32.mrb[1].mxu0  ;;  %v1352_v41 = vpop.f32.mrb[1].mxu1 }
 0x26e   : > { %v2138_v32 = vpack.c.bf16 %v1239_v35, %v1237_v12  ;;  %v2139_v1 = vpack.c.bf16 %v1352_v41, %v1350_v33  ;;  %v1241_v59 = vpop.f32.mrb[2].mxu0  ;;  %v1354_v36 = vpop.f32.mrb[2].mxu1 }
 0x26f   : > { %v1243_v58 = vpop.f32.mrb[3].mxu0  ;;  %v1356_v43 = vpop.f32.mrb[3].mxu1 }
 0x270   : > { %1830 = vst [vmem:[%s3240_s10] sm:$0xff] %v2138_v32  ;;  %1831 = vst [vmem:[%s3240_s10 + $0x8] sm:$0xff] %v2139_v1  ;;  %v2141_v57 = vpack.c.bf16 %v1243_v58, %v1241_v59  ;;  %v2142_v54 = vpack.c.bf16 %v1356_v43, %v1354_v36 }
 0x272   : > { %1833 = vst [vmem:[%s3240_s10 + $0x18] sm:$0xff] %v2141_v57  ;;  %1834 = vst [vmem:[%s3240_s10 + $0x20] sm:$0xff] %v2142_v54 }
 0x274   : > { %v1247_v27 = vpop.f32.mrb[4].mxu0  ;;  %v1360_v45 = vpop.f32.mrb[4].mxu1 }
 0x275   : > { %v1249_v48 = vpop.f32.mrb[5].mxu0  ;;  %v1362_v51 = vpop.f32.mrb[5].mxu1 }
 0x276   : > { %v2144_v13 = vpack.c.bf16 %v1249_v48, %v1247_v27  ;;  %v2145_v53 = vpack.c.bf16 %v1362_v51, %v1360_v45  ;;  %v1251_v46 = vpop.f32.mrb[6].mxu0  ;;  %v1364_v20 = vpop.f32.mrb[6].mxu1 }
 0x277   : > { %v1253_v14 = vpop.f32.mrb[7].mxu0  ;;  %v1366_v7 = vpop.f32.mrb[7].mxu1 }
 0x278   : > { %1836 = vst [vmem:[%s3240_s10 + $0x30] sm:$0xff] %v2144_v13  ;;  %1837 = vst [vmem:[%s3240_s10 + $0x38] sm:$0xff] %v2145_v53  ;;  %v2147_v29 = vpack.c.bf16 %v1253_v14, %v1251_v46  ;;  %v2148_v2 = vpack.c.bf16 %v1366_v7, %v1364_v20 }
 0x27a   : > { %1839 = vst [vmem:[%s3240_s10 + $0x48] sm:$0xff] %v2147_v29  ;;  %1840 = vst [vmem:[%s3240_s10 + $0x50] sm:$0xff] %v2148_v2 }
 0x27c   : > { %v1257_v30 = vpop.f32.mrb[8].mxu0  ;;  %v1370_v44 = vpop.f32.mrb[8].mxu1 }
 0x27d   : > { %v1259_v28 = vpop.f32.mrb[9].mxu0  ;;  %v1372_v15 = vpop.f32.mrb[9].mxu1 }
 0x27e   : > { %v2150_v31 = vpack.c.bf16 %v1259_v28, %v1257_v30  ;;  %v2151_v4 = vpack.c.bf16 %v1372_v15, %v1370_v44  ;;  %v1261_v11 = vpop.f32.mrb[10].mxu0  ;;  %v1374_v56 = vpop.f32.mrb[10].mxu1 }
 0x27f   : > { %v1263_v61 = vpop.f32.mrb[11].mxu0  ;;  %v1376_v63 = vpop.f32.mrb[11].mxu1 }
 0x280   : > { %1842 = vst [vmem:[%s3240_s10 + $0x60] sm:$0xff] %v2150_v31  ;;  %1843 = vst [vmem:[%s3240_s10 + $0x68] sm:$0xff] %v2151_v4  ;;  %v2153_v47 = vpack.c.bf16 %v1263_v61, %v1261_v11  ;;  %v2154_v0 = vpack.c.bf16 %v1376_v63, %v1374_v56 }
 0x282   : > { %1845 = vst [vmem:[%s3240_s10 + $0x78] sm:$0xff] %v2153_v47  ;;  %1846 = vst [vmem:[%s3240_s10 + $0x80] sm:$0xff] %v2154_v0 }
 0x284   : > { %v1267_v19 = vpop.f32.mrb[12].mxu0  ;;  %v1380_v21 = vpop.f32.mrb[12].mxu1 }
 0x285   : > { %v1269_v3 = vpop.f32.mrb[13].mxu0  ;;  %v1382_v50 = vpop.f32.mrb[13].mxu1 }
 0x286   : > { %v2156_v16 = vpack.c.bf16 %v1269_v3, %v1267_v19  ;;  %v2157_v9 = vpack.c.bf16 %v1382_v50, %v1380_v21  ;;  %v1271_v62 = vpop.f32.mrb[14].mxu0  ;;  %v1384_v6 = vpop.f32.mrb[14].mxu1 }
 0x287   : > { %v1273_v39 = vpop.f32.mrb[15].mxu0  ;;  %v1386_v10 = vpop.f32.mrb[15].mxu1 }
 0x288   : > { %1848 = vst [vmem:[%s3240_s10 + $0x90] sm:$0xff] %v2156_v16  ;;  %1849 = vst [vmem:[%s3240_s10 + $0x98] sm:$0xff] %v2157_v9  ;;  %v2159_v60 = vpack.c.bf16 %v1273_v39, %v1271_v62  ;;  %v2160_v37 = vpack.c.bf16 %v1386_v10, %v1384_v6 }
 0x28a   : > { %1851 = vst [vmem:[%s3240_s10 + $0xa8] sm:$0xff] %v2159_v60  ;;  %1852 = vst [vmem:[%s3240_s10 + $0xb0] sm:$0xff] %v2160_v37 }
 0x28c   : > { %v1277_v52 = vpop.f32.mrb[16].mxu0  ;;  %v1390_v55 = vpop.f32.mrb[16].mxu1 }
 0x28d   : > { %v1279_v38 = vpop.f32.mrb[17].mxu0  ;;  %v1392_v24 = vpop.f32.mrb[17].mxu1 }
 0x28e   : > { %v2162_v18 = vpack.c.bf16 %v1279_v38, %v1277_v52  ;;  %v2163_v17 = vpack.c.bf16 %v1392_v24, %v1390_v55  ;;  %v1281_v8 = vpop.f32.mrb[18].mxu0  ;;  %v1394_v49 = vpop.f32.mrb[18].mxu1 }
 0x28f   : > { %v1283_v5 = vpop.f32.mrb[19].mxu0  ;;  %v1396_v23 = vpop.f32.mrb[19].mxu1 }
 0x290   : > { %1854 = vst [vmem:[%s3240_s10 + $0xc0] sm:$0xff] %v2162_v18  ;;  %1855 = vst [vmem:[%s3240_s10 + $0xc8] sm:$0xff] %v2163_v17  ;;  %v2165_v25 = vpack.c.bf16 %v1283_v5, %v1281_v8  ;;  %v2166_v22 = vpack.c.bf16 %v1396_v23, %v1394_v49 }
 0x292   : > { %1857 = vst [vmem:[%s3240_s10 + $0xd8] sm:$0xff] %v2165_v25  ;;  %1858 = vst [vmem:[%s3240_s10 + $0xe0] sm:$0xff] %v2166_v22 }
 0x294   : > { %v1287_v26 = vpop.f32.mrb[20].mxu0  ;;  %v1400_v42 = vpop.f32.mrb[20].mxu1 }
 0x295   : > { %v1289_v40 = vpop.f32.mrb[21].mxu0  ;;  %v1402_v34 = vpop.f32.mrb[21].mxu1 }
 0x296   : > { %v2168_v12 = vpack.c.bf16 %v1289_v40, %v1287_v26  ;;  %v2169_v33 = vpack.c.bf16 %v1402_v34, %v1400_v42  ;;  %v1291_v35 = vpop.f32.mrb[22].mxu0  ;;  %v1404_v41 = vpop.f32.mrb[22].mxu1 }
 0x297   : > { %v1293_v32 = vpop.f32.mrb[23].mxu0  ;;  %v1406_v1 = vpop.f32.mrb[23].mxu1 }
 0x298   : > { %1860 = vst [vmem:[%s3240_s10 + $0xf0] sm:$0xff] %v2168_v12  ;;  %1861 = vst [vmem:[%s3240_s10 + $0xf8] sm:$0xff] %v2169_v33  ;;  %v2171_v59 = vpack.c.bf16 %v1293_v32, %v1291_v35  ;;  %v2172_v36 = vpack.c.bf16 %v1406_v1, %v1404_v41 }
 0x29a   : > { %1863 = vst [vmem:[%s3240_s10 + $0x108] sm:$0xff] %v2171_v59  ;;  %1864 = vst [vmem:[%s3240_s10 + $0x110] sm:$0xff] %v2172_v36 }
 0x29c   : > { %v1297_v58 = vpop.f32.mrb[24].mxu0  ;;  %v1410_v43 = vpop.f32.mrb[24].mxu1 }
 0x29d   : > { %v1299_v57 = vpop.f32.mrb[25].mxu0  ;;  %v1412_v54 = vpop.f32.mrb[25].mxu1 }
 0x29e   : > { %v2174_v27 = vpack.c.bf16 %v1299_v57, %v1297_v58  ;;  %v2175_v45 = vpack.c.bf16 %v1412_v54, %v1410_v43  ;;  %v1301_v48 = vpop.f32.mrb[26].mxu0  ;;  %v1414_v51 = vpop.f32.mrb[26].mxu1 }
 0x29f   : > { %v1303_v13 = vpop.f32.mrb[27].mxu0  ;;  %v1416_v53 = vpop.f32.mrb[27].mxu1 }
 0x2a0   : > { %1866 = vst [vmem:[%s3240_s10 + $0x120] sm:$0xff] %v2174_v27  ;;  %1867 = vst [vmem:[%s3240_s10 + $0x128] sm:$0xff] %v2175_v45  ;;  %v2177_v46 = vpack.c.bf16 %v1303_v13, %v1301_v48  ;;  %v2178_v20 = vpack.c.bf16 %v1416_v53, %v1414_v51 }
 0x2a2   : > { %1869 = vst [vmem:[%s3240_s10 + $0x138] sm:$0xff] %v2177_v46  ;;  %1870 = vst [vmem:[%s3240_s10 + $0x140] sm:$0xff] %v2178_v20 }
 0x2a4   : > { %v1307_v14 = vpop.f32.mrb[28].mxu0  ;;  %v1420_v7 = vpop.f32.mrb[28].mxu1 }
 0x2a5   : > { %v1309_v29 = vpop.f32.mrb[29].mxu0  ;;  %v1422_v2 = vpop.f32.mrb[29].mxu1 }
 0x2a6   : > { %v2180_v30 = vpack.c.bf16 %v1309_v29, %v1307_v14  ;;  %v2181_v44 = vpack.c.bf16 %v1422_v2, %v1420_v7  ;;  %v1311_v28 = vpop.f32.mrb[30].mxu0  ;;  %v1424_v15 = vpop.f32.mrb[30].mxu1 }
 0x2a7   : > { %v1313_v31 = vpop.f32.mrb[31].mxu0  ;;  %v1426_v4 = vpop.f32.mrb[31].mxu1 }
 0x2a8   : > { %1872 = vst [vmem:[%s3240_s10 + $0x150] sm:$0xff] %v2180_v30  ;;  %1873 = vst [vmem:[%s3240_s10 + $0x158] sm:$0xff] %v2181_v44  ;;  %v2183_v11 = vpack.c.bf16 %v1313_v31, %v1311_v28  ;;  %v2184_v56 = vpack.c.bf16 %v1426_v4, %v1424_v15 }
 0x2aa   : > { %1875 = vst [vmem:[%s3240_s10 + $0x168] sm:$0xff] %v2183_v11  ;;  %1876 = vst [vmem:[%s3240_s10 + $0x170] sm:$0xff] %v2184_v56 }
 0x2ac   : > { %v1463_v61 = vpop.f32.mrb[32].mxu0  ;;  %v1503_v63 = vpop.f32.mrb[32].mxu1 }
 0x2ad   : > { %v1465_v47 = vpop.f32.mrb[33].mxu0  ;;  %v1505_v0 = vpop.f32.mrb[33].mxu1 }
 0x2ae   : > { %v2140_v19 = vpack.c.bf16 %v1465_v47, %v1463_v61  ;;  %v2164_v21 = vpack.c.bf16 %v1505_v0, %v1503_v63  ;;  %v1467_v3 = vpop.f32.mrb[34].mxu0  ;;  %v1507_v50 = vpop.f32.mrb[34].mxu1 }
 0x2af   : > { %v1469_v16 = vpop.f32.mrb[35].mxu0  ;;  %v1509_v9 = vpop.f32.mrb[35].mxu1 }
 0x2b0   : > { %1832 = vst [vmem:[%s3240_s10 + $0x10] sm:$0xff] %v2140_v19  ;;  %1856 = vst [vmem:[%s3240_s10 + $0xd0] sm:$0xff] %v2164_v21  ;;  %v2143_v62 = vpack.c.bf16 %v1469_v16, %v1467_v3  ;;  %v2167_v6 = vpack.c.bf16 %v1509_v9, %v1507_v50 }
 0x2b2   : > { %1835 = vst [vmem:[%s3240_s10 + $0x28] sm:$0xff] %v2143_v62  ;;  %1859 = vst [vmem:[%s3240_s10 + $0xe8] sm:$0xff] %v2167_v6 }
 0x2b4   : > { %v1473_v39 = vpop.f32.mrb[36].mxu0  ;;  %v1513_v10 = vpop.f32.mrb[36].mxu1 }
 0x2b5   : > { %v1475_v60 = vpop.f32.mrb[37].mxu0  ;;  %v1515_v37 = vpop.f32.mrb[37].mxu1 }
 0x2b6   : > { %v2146_v52 = vpack.c.bf16 %v1475_v60, %v1473_v39  ;;  %v2170_v55 = vpack.c.bf16 %v1515_v37, %v1513_v10  ;;  %v1477_v38 = vpop.f32.mrb[38].mxu0  ;;  %v1517_v24 = vpop.f32.mrb[38].mxu1 }
 0x2b7   : > { %v1479_v18 = vpop.f32.mrb[39].mxu0  ;;  %v1519_v17 = vpop.f32.mrb[39].mxu1 }
 0x2b8   : > { %1838 = vst [vmem:[%s3240_s10 + $0x40] sm:$0xff] %v2146_v52  ;;  %1862 = vst [vmem:[%s3240_s10 + $0x100] sm:$0xff] %v2170_v55  ;;  %v2149_v8 = vpack.c.bf16 %v1479_v18, %v1477_v38  ;;  %v2173_v49 = vpack.c.bf16 %v1519_v17, %v1517_v24 }
 0x2ba   : > { %1841 = vst [vmem:[%s3240_s10 + $0x58] sm:$0xff] %v2149_v8  ;;  %1865 = vst [vmem:[%s3240_s10 + $0x118] sm:$0xff] %v2173_v49 }
 0x2bc   : > { %v1483_v5 = vpop.f32.mrb[40].mxu0  ;;  %v1523_v23 = vpop.f32.mrb[40].mxu1 }
 0x2bd   : > { %v1485_v25 = vpop.f32.mrb[41].mxu0  ;;  %v1525_v22 = vpop.f32.mrb[41].mxu1 }
 0x2be   : > { %v2152_v26 = vpack.c.bf16 %v1485_v25, %v1483_v5  ;;  %v2176_v42 = vpack.c.bf16 %v1525_v22, %v1523_v23  ;;  %v1487_v40 = vpop.f32.mrb[42].mxu0  ;;  %v1527_v34 = vpop.f32.mrb[42].mxu1 }
 0x2bf   : > { %v1489_v12 = vpop.f32.mrb[43].mxu0  ;;  %v1529_v33 = vpop.f32.mrb[43].mxu1 }
 0x2c0   : > { %1844 = vst [vmem:[%s3240_s10 + $0x70] sm:$0xff] %v2152_v26  ;;  %1868 = vst [vmem:[%s3240_s10 + $0x130] sm:$0xff] %v2176_v42  ;;  %v2155_v35 = vpack.c.bf16 %v1489_v12, %v1487_v40  ;;  %v2179_v41 = vpack.c.bf16 %v1529_v33, %v1527_v34 }
 0x2c2   : > { %1847 = vst [vmem:[%s3240_s10 + $0x88] sm:$0xff] %v2155_v35  ;;  %1871 = vst [vmem:[%s3240_s10 + $0x148] sm:$0xff] %v2179_v41 }
 0x2c4   : > { %v1493_v32 = vpop.f32.mrb[44].mxu0  ;;  %v1533_v1 = vpop.f32.mrb[44].mxu1 }
 0x2c5   : > { %v1495_v59 = vpop.f32.mrb[45].mxu0  ;;  %v1535_v36 = vpop.f32.mrb[45].mxu1 }
 0x2c6   : > { %v2158_v58 = vpack.c.bf16 %v1495_v59, %v1493_v32  ;;  %v2182_v43 = vpack.c.bf16 %v1535_v36, %v1533_v1  ;;  %v1497_v57 = vpop.f32.mrb[46].mxu0  ;;  %v1537_v54 = vpop.f32.mrb[46].mxu1 }
 0x2c7   : > { %v1499_v27 = vpop.f32.mrb[47].mxu0  ;;  %v1539_v45 = vpop.f32.mrb[47].mxu1 }
 0x2c8   : > { %1850 = vst [vmem:[%s3240_s10 + $0xa0] sm:$0xff] %v2158_v58  ;;  %1874 = vst [vmem:[%s3240_s10 + $0x160] sm:$0xff] %v2182_v43  ;;  %v2161_v48 = vpack.c.bf16 %v1499_v27, %v1497_v57  ;;  %v2185_v51 = vpack.c.bf16 %v1539_v45, %v1537_v54 }
 0x2ca   : > { %1853 = vst [vmem:[%s3240_s10 + $0xb8] sm:$0xff] %v2161_v48  ;;  %1877 = vst [vmem:[%s3240_s10 + $0x178] sm:$0xff] %v2185_v51 }
 0x2cb   : > { %2530 = shalt.err (!%p2527_p7)
}
 0x2cc   : > { %s2531_s20 = scalar_lea.hbm %s3291_s8, 6144  ;;  %s2535_s9 = scalar_lea.hbm %s3345_s4, 12288 }
 0x2cd   : > { %p2532_p9 = scmp.ne.s32.totalorder %s3291_s8, %s2531_s20  ;;  %p2536_p5 = scmp.lt.u32.totalorder %s3291_s8, %s3345_s4 }
 0x2ce   : > { %p2537_p11 = scmp.lt.u32.totalorder %s2535_s9, %s2531_s20  ;;  %p2539_p4 = scmp.lt.u32.totalorder %s2531_s20, %s3291_s8 }
 0x2cf   : > { %p2533_p2 = pnand %p2532_p9, %p2714_p12 }
 0x2d0   : > { %p2538_p1 = por %p2537_p11, %p2536_p5 }
 0x2d1   : > { %p2534_p0 = pneg %p2533_p2 }
 0x2d2   : > { %p2540_p6 = por %p2539_p4, %p2538_p1 }
 0x2d4   : > { %p2541_p8 = pnand %p2540_p6, %p2534_p0 }
 0x2d6   : > { %2544 = shalt.err (!%p2541_p8)
}
 0x2d7   : > { %s2596_s10 = smov 384   ;;  %s2597_s6 = smov 24  }
 0x2d8   : > { %2226 = dma.vmem_to_hbm [thread:$0]  (%p2714_p12), %s3295_s5, 6144, %s3291_s8, %s1879_s19, %s2596_s10, %s2596_s10, %s2597_s6  }
 0x2d9 PF: > { %s1908_s7 = sand.u32 1, %s2575_s15   ;;  %p3360_p10 = scmp.ne.s32.totalorder %s3350_s22, 0 }
 0x2da   : > { %p3361_p13 = scmp.ge.s32.totalorder %s2587_s18, 2  ;;  %s1909_s26 = scalar_lea.sflag [#allocation4], %s1908_s7 }
 0x2dc   : > { %p2237_p3 = pnand %p3361_p13, %p3360_p10 }
 0x2de   : > { %2570 = dma.done.wait (!%p2237_p3), %s1909_s26, 6144  }
 0x2df   : > { %2572 = vsyncadd (!%p2237_p3), %s1909_s26, 4294961152  ;;  %p18_p7 = scmp.ge.s32.totalorder %s2679_s27, 4   ;;  %s3362_s15 = smov %s2579_s16 }
 0x2e0   : > { %s3363_s16 = smov %s2583_s17  ;;  %s3364_s17 = smov %s2710_s24 }
 0x2e1   : > { %s3365_s18 = smov %s2679_s27  ;;  %20 = sbr.rel (!%p18_p7) target bundleno = 6 (0x6), region = 85 }
 0x2e8   :  { %1914 = vsyncpa [#allocation3], 1 }
 0x2e9   :  { %1916 = vsyncpa [#allocation3 + $0x1], 1 }
 0x2ea   :  { %1917 = vsyncpa [#allocation6], 1 }
 0x2eb   :  { %1918 = vsyncpa [#allocation4], 1 }
 0x2ec   :  { %1920 = vsyncpa [#allocation4 + $0x1], 1 }

</bundles_post_ra>
